<compile_context>
chip_gen: v6e
topology: v6e:2x2x1
jax: 0.10.0
libtpu: 0.0.40
codegen_flags: <defaults>
</compile_context>

<pallas_src>
import jax
import jax.numpy as jnp
from jax.experimental import pallas as pl
from jax.experimental.pallas import tpu as pltpu

_BN_EPS = 1e-5


# --------------------------------------------------------------------------- #
# Fused kernel: Conv3x3 (as 3 Toeplitz matmuls) + BN(train) stats + scale/shift + ReLU
# --------------------------------------------------------------------------- #
def _stage_kernel(xp_ref, t_ref, fold_ref, bcast_ref, g_ref, b_ref, o_ref):
    # xp_ref   : (N, H+2, (W+2)*C_in) bf16  padded activations, whole batch
    # t_ref    : (3, (W+2)*C_in, W*C_out) bf16  block-Toeplitz weights (one slab per dy)
    # fold_ref : (W*C_out, C_out) f32  0/1 mask: lane (w*C_out+co) -> channel fold
    # bcast_ref: (C_out, W*C_out) f32  0/1 mask: channel -> lane broadcast
    # g_ref    : (1, C_out) f32 gamma
    # b_ref    : (1, C_out) f32 beta
    # o_ref    : (N, H, W*C_out) out dtype (lane-dense, 128 wide at these shapes)
    N, H, WCo = o_ref.shape
    C_out = g_ref.shape[1]
    W = WCo // C_out
    inv_cnt = 1.0 / float(N * H * W)

    # ---- conv: 3 MXU matmuls per image (dy taps; dx + C_in folded into K) ----
    accs = []
    ssum = jnp.zeros((1, WCo), jnp.float32)
    ssq = jnp.zeros((1, WCo), jnp.float32)
    for n in range(N):  # N is tiny & static; becomes a parallel grid axis if it grows
        acc = jnp.dot(xp_ref[n, 0:H, :], t_ref[0], preferred_element_type=jnp.float32)
        acc = acc + jnp.dot(xp_ref[n, 1:H + 1, :], t_ref[1],
                            preferred_element_type=jnp.float32)
        acc = acc + jnp.dot(xp_ref[n, 2:H + 2, :], t_ref[2],
                            preferred_element_type=jnp.float32)
        accs.append(acc)
        ssum = ssum + jnp.sum(acc, axis=0, keepdims=True)        # (1, WCo)
        ssq = ssq + jnp.sum(acc * acc, axis=0, keepdims=True)    # (1, WCo)

    # ---- BatchNorm (training mode) statistics, folded per-channel on the MXU ----
    ch_sum = jnp.dot(ssum, fold_ref[...], preferred_element_type=jnp.float32)  # (1, C_out)
    ch_sq = jnp.dot(ssq, fold_ref[...], preferred_element_type=jnp.float32)    # (1, C_out)
    mean = ch_sum * inv_cnt
    var = ch_sq * inv_cnt - mean * mean          # biased variance (PyTorch normalization)
    inv_std = jax.lax.rsqrt(var + _BN_EPS)
    scale_c = g_ref[...] * inv_std               # (1, C_out)
    shift_c = b_ref[...] - mean * scale_c        # (1, C_out)
    # broadcast per-channel params back to the lane layout (lane = w*C_out + co)
    scale_l = jnp.dot(scale_c, bcast_ref[...], preferred_element_type=jnp.float32)  # (1, WCo)
    shift_l = jnp.dot(shift_c, bcast_ref[...], preferred_element_type=jnp.float32)  # (1, WCo)

    # ---- scale / shift / ReLU, one lane-dense store per image ----
    for n in range(N):
        y = accs[n] * scale_l + shift_l
        o_ref[n] = jnp.maximum(y, 0.0).astype(o_ref.dtype)


# --------------------------------------------------------------------------- #
# Wrapper
# --------------------------------------------------------------------------- #
def _build_toeplitz_weights(w, W_out):
    """(C_out, C_in, 3, 3) -> (3, (W_out+2)*C_in, W_out*C_out) block-Toeplitz (f32).

    T[dy, (w+dx)*C_in + ci, w*C_out + co] = w[co, ci, dy, dx]; zero elsewhere.
    Built as a dense einsum against a constant 0/1 placement mask (no runtime scatters).
    NOTE: mostly-zero slab; fine at small W / channels, switch to im2col for big shapes.
    """
    C_out, C_in = w.shape[0], w.shape[1]
    Wp = W_out + 2
    wk = jnp.transpose(w, (2, 3, 1, 0)).astype(jnp.float32)          # (dy, dx, C_in, C_out)
    # place[dx, wp, w] = 1 if wp == w + dx  (constant -> folds at compile time)
    place = (jnp.arange(Wp)[None, :, None]
             == (jnp.arange(W_out)[None, None, :] + jnp.arange(3)[:, None, None])
             ).astype(jnp.float32)                                   # (3, Wp, W_out)
    T = jnp.einsum("dpw,ydio->ypiwo", place, wk)                     # (3, Wp, C_in, W, C_out)
    return T.reshape(3, Wp * C_in, W_out * C_out)


def _conv_bn_relu_stage(x_nhwc, w, gamma, beta, *, out_dtype):
    """One Conv3x3(s1,p1) + BatchNorm2d(train) + ReLU stage, fused into one pallas_call.

    x_nhwc: (N, H, W, C_in); w: (C_out, C_in, 3, 3); gamma/beta: (C_out,)
    Returns (N, H, W, C_out) in out_dtype. Conv bias omitted (cancelled by BN mean).
    """
    N, H, W, C_in = x_nhwc.shape
    C_out = w.shape[0]
    Kdim = (W + 2) * C_in          # contraction dim per dy
    WCo = W * C_out                # lane-dense output width (128 at these shapes)

    # Single padded activation slab (one DMA), bf16 for the MXU.
    xp = jnp.pad(x_nhwc, ((0, 0), (1, 1), (1, 1), (0, 0)))
    xp = xp.reshape(N, H + 2, Kdim).astype(jnp.bfloat16)

    T = _build_toeplitz_weights(w, W).astype(jnp.bfloat16)           # (3, Kdim, WCo)

    # Constant 0/1 channel fold / broadcast masks (lane index = w*C_out + co).
    lane_ch = jnp.arange(WCo) % C_out
    fold = (lane_ch[:, None] == jnp.arange(C_out)[None, :]).astype(jnp.float32)  # (WCo, C_out)
    bcast = jnp.transpose(fold)                                                  # (C_out, WCo)

    g = gamma.astype(jnp.float32).reshape(1, C_out)
    b = beta.astype(jnp.float32).reshape(1, C_out)

    # Whole batch in one VMEM-resident block — sanity check the footprint.
    out_bytes = N * H * WCo * jnp.dtype(out_dtype).itemsize
    vmem_bytes = 2 * (xp.size + T.size) + 4 * (fold.size + bcast.size) + out_bytes
    assert vmem_bytes < 16 * 1024 * 1024, (
        "fused single-block stage would exceed conservative VMEM budget; "
        "use a tiled two-pass fallback for this shape")

    vmem = pltpu.MemorySpace.VMEM
    y = pl.pallas_call(
        _stage_kernel,
        out_shape=jax.ShapeDtypeStruct((N, H, WCo), out_dtype),
        in_specs=[pl.BlockSpec(memory_space=vmem)] * 6,
        out_specs=pl.BlockSpec(memory_space=vmem),
    )(xp, T, fold, bcast, g, b)

    return y.reshape(N, H, W, C_out)


def conv_block_forward(x_nchw, w1, b1, g1, be1, w2, b2, g2, be2):
    """conv_block forward: two (Conv3x3 + BN(train) + ReLU) stages. NCHW in/out."""
    # Conv biases are exactly cancelled by training-mode BatchNorm mean subtraction;
    # accepted for interface parity but intentionally unused.
    del b1, b2
    x = jnp.transpose(x_nchw, (0, 2, 3, 1)).astype(jnp.float32)      # NCHW -> NHWC
    y1 = _conv_bn_relu_stage(x, w1, g1, be1, out_dtype=jnp.bfloat16)  # feeds next MXU stage
    y2 = _conv_bn_relu_stage(y1, w2, g2, be2, out_dtype=jnp.float32)
    return jnp.transpose(y2, (0, 3, 1, 2))                           # NHWC -> NCHW


# --------------------------------------------------------------------------- #
# Pure-JAX reference (f32) for a sanity check
# --------------------------------------------------------------------------- #
def _reference_conv_block(x, w1, b1, g1, be1, w2, b2, g2, be2):
    def stage(x, w, b, g, be):
        y = jax.lax.conv_general_dilated(
            x, w, window_strides=(1, 1), padding="SAME",
            dimension_numbers=("NCHW", "OIHW", "NCHW"),
            precision=jax.lax.Precision.HIGHEST) + b[None, :, None, None]
        mean = y.mean(axis=(0, 2, 3), keepdims=True)
        var = jnp.mean((y - mean) ** 2, axis=(0, 2, 3), keepdims=True)
        y = (y - mean) * jax.lax.rsqrt(var + _BN_EPS)
        y = y * g[None, :, None, None] + be[None, :, None, None]
        return jnp.maximum(y, 0.0)
    return stage(stage(x, w1, b1, g1, be1), w2, b2, g2, be2)


# --------------------------------------------------------------------------- #
# Main
# --------------------------------------------------------------------------- #
if __name__ == "__main__":
    N, C_IN, C_OUT, H, W = 2, 4, 8, 16, 16

    key = jax.random.PRNGKey(0)
    ks = jax.random.split(key, 7)

    x = jax.random.normal(ks[0], (N, C_IN, H, W), dtype=jnp.float32)
    w1 = jax.random.normal(ks[1], (C_OUT, C_IN, 3, 3), dtype=jnp.float32) * 0.1
    b1 = jax.random.normal(ks[2], (C_OUT,), dtype=jnp.float32) * 0.1
    w2 = jax.random.normal(ks[3], (C_OUT, C_OUT, 3, 3), dtype=jnp.float32) * 0.1
    b2 = jax.random.normal(ks[4], (C_OUT,), dtype=jnp.float32) * 0.1
    g1 = 1.0 + 0.1 * jax.random.normal(ks[5], (C_OUT,), dtype=jnp.float32)
    be1 = 0.1 * jax.random.normal(ks[6], (C_OUT,), dtype=jnp.float32)
    g2 = jnp.ones((C_OUT,), dtype=jnp.float32)     # BatchNorm2d default affine init
    be2 = jnp.zeros((C_OUT,), dtype=jnp.float32)

    fwd = jax.jit(conv_block_forward)
    out = fwd(x, w1, b1, g1, be1, w2, b2, g2, be2)
    jax.block_until_ready(out)
    assert out.shape == (N, C_OUT, H, W), out.shape

    ref = _reference_conv_block(x, w1, b1, g1, be1, w2, b2, g2, be2)
    max_err = float(jnp.max(jnp.abs(out - ref)))
    assert max_err < 0.1, f"max abs err vs reference: {max_err}"

    print("KERNEL_OK")
</pallas_src>

<mosaic_0001>
module attributes {stable_mosaic.version = 11 : i64} {
  func.func @_stage_kernel(%arg0: memref<2x18x72xbf16, #tpu.memory_space<vmem>>, %arg1: memref<3x72x128xbf16, #tpu.memory_space<vmem>>, %arg2: memref<128x8xf32, #tpu.memory_space<vmem>>, %arg3: memref<8x128xf32, #tpu.memory_space<vmem>>, %arg4: memref<1x8xf32, #tpu.memory_space<vmem>>, %arg5: memref<1x8xf32, #tpu.memory_space<vmem>>, %arg6: memref<2x16x128xbf16, #tpu.memory_space<vmem>>) attributes {dimension_semantics = [], scalar_prefetch = 0 : i64, scratch_operands = 0 : i64, tpu.core_type = #tpu.core_type<tc>} {
    %cst = arith.constant 0.000000e+00 : f32
    %0 = vector.broadcast %cst : f32 to vector<1x128xf32>
    %cst_0 = arith.constant 0.000000e+00 : f32
    %1 = vector.broadcast %cst_0 : f32 to vector<1x128xf32>
    %c0 = arith.constant 0 : index
    %c0_1 = arith.constant 0 : index
    %c0_2 = arith.constant 0 : index
    %2 = vector.load %arg0[%c0, %c0_1, %c0_2] : memref<2x18x72xbf16, #tpu.memory_space<vmem>>, vector<1x16x72xbf16>
    %3 = vector.shape_cast %2 : vector<1x16x72xbf16> to vector<16x72xbf16>
    %c0_3 = arith.constant 0 : index
    %c0_4 = arith.constant 0 : index
    %c0_5 = arith.constant 0 : index
    %4 = vector.load %arg1[%c0_3, %c0_4, %c0_5] : memref<3x72x128xbf16, #tpu.memory_space<vmem>>, vector<1x72x128xbf16>
    %5 = vector.shape_cast %4 : vector<1x72x128xbf16> to vector<72x128xbf16>
    %cst_6 = arith.constant dense<0.000000e+00> : vector<16x128xf32>
    %6 = tpu.matmul %3, %5, %cst_6 {dimension_numbers = #tpu.dot_dimension_numbers<[1], [0], [0], [1], [0, 0, 1, 1], [], []>} : vector<16x72xbf16>, vector<72x128xbf16>, vector<16x128xf32> -> vector<16x128xf32>
    %c0_7 = arith.constant 0 : index
    %c1 = arith.constant 1 : index
    %c0_8 = arith.constant 0 : index
    %7 = vector.load %arg0[%c0_7, %c1, %c0_8] : memref<2x18x72xbf16, #tpu.memory_space<vmem>>, vector<1x16x72xbf16>
    %8 = vector.shape_cast %7 : vector<1x16x72xbf16> to vector<16x72xbf16>
    %c1_9 = arith.constant 1 : index
    %c0_10 = arith.constant 0 : index
    %c0_11 = arith.constant 0 : index
    %9 = vector.load %arg1[%c1_9, %c0_10, %c0_11] : memref<3x72x128xbf16, #tpu.memory_space<vmem>>, vector<1x72x128xbf16>
    %10 = vector.shape_cast %9 : vector<1x72x128xbf16> to vector<72x128xbf16>
    %cst_12 = arith.constant dense<0.000000e+00> : vector<16x128xf32>
    %11 = tpu.matmul %8, %10, %cst_12 {dimension_numbers = #tpu.dot_dimension_numbers<[1], [0], [0], [1], [0, 0, 1, 1], [], []>} : vector<16x72xbf16>, vector<72x128xbf16>, vector<16x128xf32> -> vector<16x128xf32>
    %12 = arith.addf %6, %11 : vector<16x128xf32>
    %c0_13 = arith.constant 0 : index
    %c2 = arith.constant 2 : index
    %c0_14 = arith.constant 0 : index
    %13 = vector.load %arg0[%c0_13, %c2, %c0_14] : memref<2x18x72xbf16, #tpu.memory_space<vmem>>, vector<1x16x72xbf16>
    %14 = vector.shape_cast %13 : vector<1x16x72xbf16> to vector<16x72xbf16>
    %c2_15 = arith.constant 2 : index
    %c0_16 = arith.constant 0 : index
    %c0_17 = arith.constant 0 : index
    %15 = vector.load %arg1[%c2_15, %c0_16, %c0_17] : memref<3x72x128xbf16, #tpu.memory_space<vmem>>, vector<1x72x128xbf16>
    %16 = vector.shape_cast %15 : vector<1x72x128xbf16> to vector<72x128xbf16>
    %cst_18 = arith.constant dense<0.000000e+00> : vector<16x128xf32>
    %17 = tpu.matmul %14, %16, %cst_18 {dimension_numbers = #tpu.dot_dimension_numbers<[1], [0], [0], [1], [0, 0, 1, 1], [], []>} : vector<16x72xbf16>, vector<72x128xbf16>, vector<16x128xf32> -> vector<16x128xf32>
    %18 = arith.addf %12, %17 : vector<16x128xf32>
    %cst_19 = arith.constant dense<0.000000e+00> : vector<128xf32>
    %19 = vector.multi_reduction <add>, %18, %cst_19 [0] : vector<16x128xf32> to vector<128xf32>
    %20 = vector.shape_cast %19 : vector<128xf32> to vector<1x128xf32>
    %21 = arith.addf %0, %20 : vector<1x128xf32>
    %22 = arith.mulf %18, %18 : vector<16x128xf32>
    %cst_20 = arith.constant dense<0.000000e+00> : vector<128xf32>
    %23 = vector.multi_reduction <add>, %22, %cst_20 [0] : vector<16x128xf32> to vector<128xf32>
    %24 = vector.shape_cast %23 : vector<128xf32> to vector<1x128xf32>
    %25 = arith.addf %1, %24 : vector<1x128xf32>
    %c1_21 = arith.constant 1 : index
    %c0_22 = arith.constant 0 : index
    %c0_23 = arith.constant 0 : index
    %26 = vector.load %arg0[%c1_21, %c0_22, %c0_23] : memref<2x18x72xbf16, #tpu.memory_space<vmem>>, vector<1x16x72xbf16>
    %27 = vector.shape_cast %26 : vector<1x16x72xbf16> to vector<16x72xbf16>
    %c0_24 = arith.constant 0 : index
    %c0_25 = arith.constant 0 : index
    %c0_26 = arith.constant 0 : index
    %28 = vector.load %arg1[%c0_24, %c0_25, %c0_26] : memref<3x72x128xbf16, #tpu.memory_space<vmem>>, vector<1x72x128xbf16>
    %29 = vector.shape_cast %28 : vector<1x72x128xbf16> to vector<72x128xbf16>
    %cst_27 = arith.constant dense<0.000000e+00> : vector<16x128xf32>
    %30 = tpu.matmul %27, %29, %cst_27 {dimension_numbers = #tpu.dot_dimension_numbers<[1], [0], [0], [1], [0, 0, 1, 1], [], []>} : vector<16x72xbf16>, vector<72x128xbf16>, vector<16x128xf32> -> vector<16x128xf32>
    %c1_28 = arith.constant 1 : index
    %c1_29 = arith.constant 1 : index
    %c0_30 = arith.constant 0 : index
    %31 = vector.load %arg0[%c1_28, %c1_29, %c0_30] : memref<2x18x72xbf16, #tpu.memory_space<vmem>>, vector<1x16x72xbf16>
    %32 = vector.shape_cast %31 : vector<1x16x72xbf16> to vector<16x72xbf16>
    %c1_31 = arith.constant 1 : index
    %c0_32 = arith.constant 0 : index
    %c0_33 = arith.constant 0 : index
    %33 = vector.load %arg1[%c1_31, %c0_32, %c0_33] : memref<3x72x128xbf16, #tpu.memory_space<vmem>>, vector<1x72x128xbf16>
    %34 = vector.shape_cast %33 : vector<1x72x128xbf16> to vector<72x128xbf16>
    %cst_34 = arith.constant dense<0.000000e+00> : vector<16x128xf32>
    %35 = tpu.matmul %32, %34, %cst_34 {dimension_numbers = #tpu.dot_dimension_numbers<[1], [0], [0], [1], [0, 0, 1, 1], [], []>} : vector<16x72xbf16>, vector<72x128xbf16>, vector<16x128xf32> -> vector<16x128xf32>
    %36 = arith.addf %30, %35 : vector<16x128xf32>
    %c1_35 = arith.constant 1 : index
    %c2_36 = arith.constant 2 : index
    %c0_37 = arith.constant 0 : index
    %37 = vector.load %arg0[%c1_35, %c2_36, %c0_37] : memref<2x18x72xbf16, #tpu.memory_space<vmem>>, vector<1x16x72xbf16>
    %38 = vector.shape_cast %37 : vector<1x16x72xbf16> to vector<16x72xbf16>
    %c2_38 = arith.constant 2 : index
    %c0_39 = arith.constant 0 : index
    %c0_40 = arith.constant 0 : index
    %39 = vector.load %arg1[%c2_38, %c0_39, %c0_40] : memref<3x72x128xbf16, #tpu.memory_space<vmem>>, vector<1x72x128xbf16>
    %40 = vector.shape_cast %39 : vector<1x72x128xbf16> to vector<72x128xbf16>
    %cst_41 = arith.constant dense<0.000000e+00> : vector<16x128xf32>
    %41 = tpu.matmul %38, %40, %cst_41 {dimension_numbers = #tpu.dot_dimension_numbers<[1], [0], [0], [1], [0, 0, 1, 1], [], []>} : vector<16x72xbf16>, vector<72x128xbf16>, vector<16x128xf32> -> vector<16x128xf32>
    %42 = arith.addf %36, %41 : vector<16x128xf32>
    %cst_42 = arith.constant dense<0.000000e+00> : vector<128xf32>
    %43 = vector.multi_reduction <add>, %42, %cst_42 [0] : vector<16x128xf32> to vector<128xf32>
    %44 = vector.shape_cast %43 : vector<128xf32> to vector<1x128xf32>
    %45 = arith.addf %21, %44 : vector<1x128xf32>
    %46 = arith.mulf %42, %42 : vector<16x128xf32>
    %cst_43 = arith.constant dense<0.000000e+00> : vector<128xf32>
    %47 = vector.multi_reduction <add>, %46, %cst_43 [0] : vector<16x128xf32> to vector<128xf32>
    %48 = vector.shape_cast %47 : vector<128xf32> to vector<1x128xf32>
    %49 = arith.addf %25, %48 : vector<1x128xf32>
    %c0_44 = arith.constant 0 : index
    %c0_45 = arith.constant 0 : index
    %50 = vector.load %arg2[%c0_44, %c0_45] : memref<128x8xf32, #tpu.memory_space<vmem>>, vector<128x8xf32>
    %cst_46 = arith.constant dense<0.000000e+00> : vector<1x8xf32>
    %51 = tpu.matmul %45, %50, %cst_46 {dimension_numbers = #tpu.dot_dimension_numbers<[1], [0], [0], [1], [0, 0, 1, 1], [], []>} : vector<1x128xf32>, vector<128x8xf32>, vector<1x8xf32> -> vector<1x8xf32>
    %c0_47 = arith.constant 0 : index
    %c0_48 = arith.constant 0 : index
    %52 = vector.load %arg2[%c0_47, %c0_48] : memref<128x8xf32, #tpu.memory_space<vmem>>, vector<128x8xf32>
    %cst_49 = arith.constant dense<0.000000e+00> : vector<1x8xf32>
    %53 = tpu.matmul %49, %52, %cst_49 {dimension_numbers = #tpu.dot_dimension_numbers<[1], [0], [0], [1], [0, 0, 1, 1], [], []>} : vector<1x128xf32>, vector<128x8xf32>, vector<1x8xf32> -> vector<1x8xf32>
    %cst_50 = arith.constant 0.001953125 : f32
    %54 = vector.broadcast %cst_50 : f32 to vector<1x8xf32>
    %55 = arith.mulf %51, %54 : vector<1x8xf32>
    %cst_51 = arith.constant 0.001953125 : f32
    %56 = vector.broadcast %cst_51 : f32 to vector<1x8xf32>
    %57 = arith.mulf %53, %56 : vector<1x8xf32>
    %58 = arith.mulf %55, %55 : vector<1x8xf32>
    %59 = arith.subf %57, %58 : vector<1x8xf32>
    %cst_52 = arith.constant 9.99999974E-6 : f32
    %60 = vector.broadcast %cst_52 : f32 to vector<1x8xf32>
    %61 = arith.addf %59, %60 : vector<1x8xf32>
    %62 = math.rsqrt %61 : vector<1x8xf32>
    %c0_53 = arith.constant 0 : index
    %c0_54 = arith.constant 0 : index
    %63 = vector.load %arg4[%c0_53, %c0_54] : memref<1x8xf32, #tpu.memory_space<vmem>>, vector<1x8xf32>
    %64 = arith.mulf %63, %62 : vector<1x8xf32>
    %c0_55 = arith.constant 0 : index
    %c0_56 = arith.constant 0 : index
    %65 = vector.load %arg5[%c0_55, %c0_56] : memref<1x8xf32, #tpu.memory_space<vmem>>, vector<1x8xf32>
    %66 = arith.mulf %55, %64 : vector<1x8xf32>
    %67 = arith.subf %65, %66 : vector<1x8xf32>
    %c0_57 = arith.constant 0 : index
    %c0_58 = arith.constant 0 : index
    %68 = vector.load %arg3[%c0_57, %c0_58] : memref<8x128xf32, #tpu.memory_space<vmem>>, vector<8x128xf32>
    %cst_59 = arith.constant dense<0.000000e+00> : vector<1x128xf32>
    %69 = tpu.matmul %64, %68, %cst_59 {dimension_numbers = #tpu.dot_dimension_numbers<[1], [0], [0], [1], [0, 0, 1, 1], [], []>} : vector<1x8xf32>, vector<8x128xf32>, vector<1x128xf32> -> vector<1x128xf32>
    %c0_60 = arith.constant 0 : index
    %c0_61 = arith.constant 0 : index
    %70 = vector.load %arg3[%c0_60, %c0_61] : memref<8x128xf32, #tpu.memory_space<vmem>>, vector<8x128xf32>
    %cst_62 = arith.constant dense<0.000000e+00> : vector<1x128xf32>
    %71 = tpu.matmul %67, %70, %cst_62 {dimension_numbers = #tpu.dot_dimension_numbers<[1], [0], [0], [1], [0, 0, 1, 1], [], []>} : vector<1x8xf32>, vector<8x128xf32>, vector<1x128xf32> -> vector<1x128xf32>
    %72 = vector.broadcast %69 : vector<1x128xf32> to vector<16x128xf32>
    %73 = arith.mulf %18, %72 : vector<16x128xf32>
    %74 = vector.broadcast %71 : vector<1x128xf32> to vector<16x128xf32>
    %75 = arith.addf %73, %74 : vector<16x128xf32>
    %cst_63 = arith.constant 0.000000e+00 : f32
    %76 = vector.broadcast %cst_63 : f32 to vector<16x128xf32>
    %77 = arith.maximumf %75, %76 : vector<16x128xf32>
    %78 = arith.truncf %77 : vector<16x128xf32> to vector<16x128xbf16>
    %c0_64 = arith.constant 0 : index
    %c0_65 = arith.constant 0 : index
    %c0_66 = arith.constant 0 : index
    %79 = vector.load %arg6[%c0_64, %c0_65, %c0_66] : memref<2x16x128xbf16, #tpu.memory_space<vmem>>, vector<1x16x128xbf16>
    %80 = vector.shape_cast %79 : vector<1x16x128xbf16> to vector<16x128xbf16>
    %81 = vector.shape_cast %78 : vector<16x128xbf16> to vector<1x16x128xbf16>
    tpu.vector_store %arg6[%c0_64, %c0_65, %c0_66], %81 {strides = array<i32>} : memref<2x16x128xbf16, #tpu.memory_space<vmem>>, vector<1x16x128xbf16>,
    %82 = vector.broadcast %69 : vector<1x128xf32> to vector<16x128xf32>
    %83 = arith.mulf %42, %82 : vector<16x128xf32>
    %84 = vector.broadcast %71 : vector<1x128xf32> to vector<16x128xf32>
    %85 = arith.addf %83, %84 : vector<16x128xf32>
    %cst_67 = arith.constant 0.000000e+00 : f32
    %86 = vector.broadcast %cst_67 : f32 to vector<16x128xf32>
    %87 = arith.maximumf %85, %86 : vector<16x128xf32>
    %88 = arith.truncf %87 : vector<16x128xf32> to vector<16x128xbf16>
    %c1_68 = arith.constant 1 : index
    %c0_69 = arith.constant 0 : index
    %c0_70 = arith.constant 0 : index
    %89 = vector.load %arg6[%c1_68, %c0_69, %c0_70] : memref<2x16x128xbf16, #tpu.memory_space<vmem>>, vector<1x16x128xbf16>
    %90 = vector.shape_cast %89 : vector<1x16x128xbf16> to vector<16x128xbf16>
    %91 = vector.shape_cast %88 : vector<16x128xbf16> to vector<1x16x128xbf16>
    tpu.vector_store %arg6[%c1_68, %c0_69, %c0_70], %91 {strides = array<i32>} : memref<2x16x128xbf16, #tpu.memory_space<vmem>>, vector<1x16x128xbf16>,
    return
  }
}

module attributes {stable_mosaic.version = 11 : i64} {
  func.func @_stage_kernel(%arg0: memref<2x18x144xbf16, #tpu.memory_space<vmem>>, %arg1: memref<3x144x128xbf16, #tpu.memory_space<vmem>>, %arg2: memref<128x8xf32, #tpu.memory_space<vmem>>, %arg3: memref<8x128xf32, #tpu.memory_space<vmem>>, %arg4: memref<1x8xf32, #tpu.memory_space<vmem>>, %arg5: memref<1x8xf32, #tpu.memory_space<vmem>>, %arg6: memref<2x16x128xf32, #tpu.memory_space<vmem>>) attributes {dimension_semantics = [], scalar_prefetch = 0 : i64, scratch_operands = 0 : i64, tpu.core_type = #tpu.core_type<tc>} {
    %cst = arith.constant 0.000000e+00 : f32
    %0 = vector.broadcast %cst : f32 to vector<1x128xf32>
    %cst_0 = arith.constant 0.000000e+00 : f32
    %1 = vector.broadcast %cst_0 : f32 to vector<1x128xf32>
    %c0 = arith.constant 0 : index
    %c0_1 = arith.constant 0 : index
    %c0_2 = arith.constant 0 : index
    %2 = vector.load %arg0[%c0, %c0_1, %c0_2] : memref<2x18x144xbf16, #tpu.memory_space<vmem>>, vector<1x16x144xbf16>
    %3 = vector.shape_cast %2 : vector<1x16x144xbf16> to vector<16x144xbf16>
    %c0_3 = arith.constant 0 : index
    %c0_4 = arith.constant 0 : index
    %c0_5 = arith.constant 0 : index
    %4 = vector.load %arg1[%c0_3, %c0_4, %c0_5] : memref<3x144x128xbf16, #tpu.memory_space<vmem>>, vector<1x144x128xbf16>
    %5 = vector.shape_cast %4 : vector<1x144x128xbf16> to vector<144x128xbf16>
    %cst_6 = arith.constant dense<0.000000e+00> : vector<16x128xf32>
    %6 = tpu.matmul %3, %5, %cst_6 {dimension_numbers = #tpu.dot_dimension_numbers<[1], [0], [0], [1], [0, 0, 1, 1], [], []>} : vector<16x144xbf16>, vector<144x128xbf16>, vector<16x128xf32> -> vector<16x128xf32>
    %c0_7 = arith.constant 0 : index
    %c1 = arith.constant 1 : index
    %c0_8 = arith.constant 0 : index
    %7 = vector.load %arg0[%c0_7, %c1, %c0_8] : memref<2x18x144xbf16, #tpu.memory_space<vmem>>, vector<1x16x144xbf16>
    %8 = vector.shape_cast %7 : vector<1x16x144xbf16> to vector<16x144xbf16>
    %c1_9 = arith.constant 1 : index
    %c0_10 = arith.constant 0 : index
    %c0_11 = arith.constant 0 : index
    %9 = vector.load %arg1[%c1_9, %c0_10, %c0_11] : memref<3x144x128xbf16, #tpu.memory_space<vmem>>, vector<1x144x128xbf16>
    %10 = vector.shape_cast %9 : vector<1x144x128xbf16> to vector<144x128xbf16>
    %cst_12 = arith.constant dense<0.000000e+00> : vector<16x128xf32>
    %11 = tpu.matmul %8, %10, %cst_12 {dimension_numbers = #tpu.dot_dimension_numbers<[1], [0], [0], [1], [0, 0, 1, 1], [], []>} : vector<16x144xbf16>, vector<144x128xbf16>, vector<16x128xf32> -> vector<16x128xf32>
    %12 = arith.addf %6, %11 : vector<16x128xf32>
    %c0_13 = arith.constant 0 : index
    %c2 = arith.constant 2 : index
    %c0_14 = arith.constant 0 : index
    %13 = vector.load %arg0[%c0_13, %c2, %c0_14] : memref<2x18x144xbf16, #tpu.memory_space<vmem>>, vector<1x16x144xbf16>
    %14 = vector.shape_cast %13 : vector<1x16x144xbf16> to vector<16x144xbf16>
    %c2_15 = arith.constant 2 : index
    %c0_16 = arith.constant 0 : index
    %c0_17 = arith.constant 0 : index
    %15 = vector.load %arg1[%c2_15, %c0_16, %c0_17] : memref<3x144x128xbf16, #tpu.memory_space<vmem>>, vector<1x144x128xbf16>
    %16 = vector.shape_cast %15 : vector<1x144x128xbf16> to vector<144x128xbf16>
    %cst_18 = arith.constant dense<0.000000e+00> : vector<16x128xf32>
    %17 = tpu.matmul %14, %16, %cst_18 {dimension_numbers = #tpu.dot_dimension_numbers<[1], [0], [0], [1], [0, 0, 1, 1], [], []>} : vector<16x144xbf16>, vector<144x128xbf16>, vector<16x128xf32> -> vector<16x128xf32>
    %18 = arith.addf %12, %17 : vector<16x128xf32>
    %cst_19 = arith.constant dense<0.000000e+00> : vector<128xf32>
    %19 = vector.multi_reduction <add>, %18, %cst_19 [0] : vector<16x128xf32> to vector<128xf32>
    %20 = vector.shape_cast %19 : vector<128xf32> to vector<1x128xf32>
    %21 = arith.addf %0, %20 : vector<1x128xf32>
    %22 = arith.mulf %18, %18 : vector<16x128xf32>
    %cst_20 = arith.constant dense<0.000000e+00> : vector<128xf32>
    %23 = vector.multi_reduction <add>, %22, %cst_20 [0] : vector<16x128xf32> to vector<128xf32>
    %24 = vector.shape_cast %23 : vector<128xf32> to vector<1x128xf32>
    %25 = arith.addf %1, %24 : vector<1x128xf32>
    %c1_21 = arith.constant 1 : index
    %c0_22 = arith.constant 0 : index
    %c0_23 = arith.constant 0 : index
    %26 = vector.load %arg0[%c1_21, %c0_22, %c0_23] : memref<2x18x144xbf16, #tpu.memory_space<vmem>>, vector<1x16x144xbf16>
    %27 = vector.shape_cast %26 : vector<1x16x144xbf16> to vector<16x144xbf16>
    %c0_24 = arith.constant 0 : index
    %c0_25 = arith.constant 0 : index
    %c0_26 = arith.constant 0 : index
    %28 = vector.load %arg1[%c0_24, %c0_25, %c0_26] : memref<3x144x128xbf16, #tpu.memory_space<vmem>>, vector<1x144x128xbf16>
    %29 = vector.shape_cast %28 : vector<1x144x128xbf16> to vector<144x128xbf16>
    %cst_27 = arith.constant dense<0.000000e+00> : vector<16x128xf32>
    %30 = tpu.matmul %27, %29, %cst_27 {dimension_numbers = #tpu.dot_dimension_numbers<[1], [0], [0], [1], [0, 0, 1, 1], [], []>} : vector<16x144xbf16>, vector<144x128xbf16>, vector<16x128xf32> -> vector<16x128xf32>
    %c1_28 = arith.constant 1 : index
    %c1_29 = arith.constant 1 : index
    %c0_30 = arith.constant 0 : index
    %31 = vector.load %arg0[%c1_28, %c1_29, %c0_30] : memref<2x18x144xbf16, #tpu.memory_space<vmem>>, vector<1x16x144xbf16>
    %32 = vector.shape_cast %31 : vector<1x16x144xbf16> to vector<16x144xbf16>
    %c1_31 = arith.constant 1 : index
    %c0_32 = arith.constant 0 : index
    %c0_33 = arith.constant 0 : index
    %33 = vector.load %arg1[%c1_31, %c0_32, %c0_33] : memref<3x144x128xbf16, #tpu.memory_space<vmem>>, vector<1x144x128xbf16>
    %34 = vector.shape_cast %33 : vector<1x144x128xbf16> to vector<144x128xbf16>
    %cst_34 = arith.constant dense<0.000000e+00> : vector<16x128xf32>
    %35 = tpu.matmul %32, %34, %cst_34 {dimension_numbers = #tpu.dot_dimension_numbers<[1], [0], [0], [1], [0, 0, 1, 1], [], []>} : vector<16x144xbf16>, vector<144x128xbf16>, vector<16x128xf32> -> vector<16x128xf32>
    %36 = arith.addf %30, %35 : vector<16x128xf32>
    %c1_35 = arith.constant 1 : index
    %c2_36 = arith.constant 2 : index
    %c0_37 = arith.constant 0 : index
    %37 = vector.load %arg0[%c1_35, %c2_36, %c0_37] : memref<2x18x144xbf16, #tpu.memory_space<vmem>>, vector<1x16x144xbf16>
    %38 = vector.shape_cast %37 : vector<1x16x144xbf16> to vector<16x144xbf16>
    %c2_38 = arith.constant 2 : index
    %c0_39 = arith.constant 0 : index
    %c0_40 = arith.constant 0 : index
    %39 = vector.load %arg1[%c2_38, %c0_39, %c0_40] : memref<3x144x128xbf16, #tpu.memory_space<vmem>>, vector<1x144x128xbf16>
    %40 = vector.shape_cast %39 : vector<1x144x128xbf16> to vector<144x128xbf16>
    %cst_41 = arith.constant dense<0.000000e+00> : vector<16x128xf32>
    %41 = tpu.matmul %38, %40, %cst_41 {dimension_numbers = #tpu.dot_dimension_numbers<[1], [0], [0], [1], [0, 0, 1, 1], [], []>} : vector<16x144xbf16>, vector<144x128xbf16>, vector<16x128xf32> -> vector<16x128xf32>
    %42 = arith.addf %36, %41 : vector<16x128xf32>
    %cst_42 = arith.constant dense<0.000000e+00> : vector<128xf32>
    %43 = vector.multi_reduction <add>, %42, %cst_42 [0] : vector<16x128xf32> to vector<128xf32>
    %44 = vector.shape_cast %43 : vector<128xf32> to vector<1x128xf32>
    %45 = arith.addf %21, %44 : vector<1x128xf32>
    %46 = arith.mulf %42, %42 : vector<16x128xf32>
    %cst_43 = arith.constant dense<0.000000e+00> : vector<128xf32>
    %47 = vector.multi_reduction <add>, %46, %cst_43 [0] : vector<16x128xf32> to vector<128xf32>
    %48 = vector.shape_cast %47 : vector<128xf32> to vector<1x128xf32>
    %49 = arith.addf %25, %48 : vector<1x128xf32>
    %c0_44 = arith.constant 0 : index
    %c0_45 = arith.constant 0 : index
    %50 = vector.load %arg2[%c0_44, %c0_45] : memref<128x8xf32, #tpu.memory_space<vmem>>, vector<128x8xf32>
    %cst_46 = arith.constant dense<0.000000e+00> : vector<1x8xf32>
    %51 = tpu.matmul %45, %50, %cst_46 {dimension_numbers = #tpu.dot_dimension_numbers<[1], [0], [0], [1], [0, 0, 1, 1], [], []>} : vector<1x128xf32>, vector<128x8xf32>, vector<1x8xf32> -> vector<1x8xf32>
    %c0_47 = arith.constant 0 : index
    %c0_48 = arith.constant 0 : index
    %52 = vector.load %arg2[%c0_47, %c0_48] : memref<128x8xf32, #tpu.memory_space<vmem>>, vector<128x8xf32>
    %cst_49 = arith.constant dense<0.000000e+00> : vector<1x8xf32>
    %53 = tpu.matmul %49, %52, %cst_49 {dimension_numbers = #tpu.dot_dimension_numbers<[1], [0], [0], [1], [0, 0, 1, 1], [], []>} : vector<1x128xf32>, vector<128x8xf32>, vector<1x8xf32> -> vector<1x8xf32>
    %cst_50 = arith.constant 0.001953125 : f32
    %54 = vector.broadcast %cst_50 : f32 to vector<1x8xf32>
    %55 = arith.mulf %51, %54 : vector<1x8xf32>
    %cst_51 = arith.constant 0.001953125 : f32
    %56 = vector.broadcast %cst_51 : f32 to vector<1x8xf32>
    %57 = arith.mulf %53, %56 : vector<1x8xf32>
    %58 = arith.mulf %55, %55 : vector<1x8xf32>
    %59 = arith.subf %57, %58 : vector<1x8xf32>
    %cst_52 = arith.constant 9.99999974E-6 : f32
    %60 = vector.broadcast %cst_52 : f32 to vector<1x8xf32>
    %61 = arith.addf %59, %60 : vector<1x8xf32>
    %62 = math.rsqrt %61 : vector<1x8xf32>
    %c0_53 = arith.constant 0 : index
    %c0_54 = arith.constant 0 : index
    %63 = vector.load %arg4[%c0_53, %c0_54] : memref<1x8xf32, #tpu.memory_space<vmem>>, vector<1x8xf32>
    %64 = arith.mulf %63, %62 : vector<1x8xf32>
    %c0_55 = arith.constant 0 : index
    %c0_56 = arith.constant 0 : index
    %65 = vector.load %arg5[%c0_55, %c0_56] : memref<1x8xf32, #tpu.memory_space<vmem>>, vector<1x8xf32>
    %66 = arith.mulf %55, %64 : vector<1x8xf32>
    %67 = arith.subf %65, %66 : vector<1x8xf32>
    %c0_57 = arith.constant 0 : index
    %c0_58 = arith.constant 0 : index
    %68 = vector.load %arg3[%c0_57, %c0_58] : memref<8x128xf32, #tpu.memory_space<vmem>>, vector<8x128xf32>
    %cst_59 = arith.constant dense<0.000000e+00> : vector<1x128xf32>
    %69 = tpu.matmul %64, %68, %cst_59 {dimension_numbers = #tpu.dot_dimension_numbers<[1], [0], [0], [1], [0, 0, 1, 1], [], []>} : vector<1x8xf32>, vector<8x128xf32>, vector<1x128xf32> -> vector<1x128xf32>
    %c0_60 = arith.constant 0 : index
    %c0_61 = arith.constant 0 : index
    %70 = vector.load %arg3[%c0_60, %c0_61] : memref<8x128xf32, #tpu.memory_space<vmem>>, vector<8x128xf32>
    %cst_62 = arith.constant dense<0.000000e+00> : vector<1x128xf32>
    %71 = tpu.matmul %67, %70, %cst_62 {dimension_numbers = #tpu.dot_dimension_numbers<[1], [0], [0], [1], [0, 0, 1, 1], [], []>} : vector<1x8xf32>, vector<8x128xf32>, vector<1x128xf32> -> vector<1x128xf32>
    %72 = vector.broadcast %69 : vector<1x128xf32> to vector<16x128xf32>
    %73 = arith.mulf %18, %72 : vector<16x128xf32>
    %74 = vector.broadcast %71 : vector<1x128xf32> to vector<16x128xf32>
    %75 = arith.addf %73, %74 : vector<16x128xf32>
    %cst_63 = arith.constant 0.000000e+00 : f32
    %76 = vector.broadcast %cst_63 : f32 to vector<16x128xf32>
    %77 = arith.maximumf %75, %76 : vector<16x128xf32>
    %c0_64 = arith.constant 0 : index
    %c0_65 = arith.constant 0 : index
    %c0_66 = arith.constant 0 : index
    %78 = vector.load %arg6[%c0_64, %c0_65, %c0_66] : memref<2x16x128xf32, #tpu.memory_space<vmem>>, vector<1x16x128xf32>
    %79 = vector.shape_cast %78 : vector<1x16x128xf32> to vector<16x128xf32>
    %80 = vector.shape_cast %77 : vector<16x128xf32> to vector<1x16x128xf32>
    tpu.vector_store %arg6[%c0_64, %c0_65, %c0_66], %80 {strides = array<i32>} : memref<2x16x128xf32, #tpu.memory_space<vmem>>, vector<1x16x128xf32>,
    %81 = vector.broadcast %69 : vector<1x128xf32> to vector<16x128xf32>
    %82 = arith.mulf %42, %81 : vector<16x128xf32>
    %83 = vector.broadcast %71 : vector<1x128xf32> to vector<16x128xf32>
    %84 = arith.addf %82, %83 : vector<16x128xf32>
    %cst_67 = arith.constant 0.000000e+00 : f32
    %85 = vector.broadcast %cst_67 : f32 to vector<16x128xf32>
    %86 = arith.maximumf %84, %85 : vector<16x128xf32>
    %c1_68 = arith.constant 1 : index
    %c0_69 = arith.constant 0 : index
    %c0_70 = arith.constant 0 : index
    %87 = vector.load %arg6[%c1_68, %c0_69, %c0_70] : memref<2x16x128xf32, #tpu.memory_space<vmem>>, vector<1x16x128xf32>
    %88 = vector.shape_cast %87 : vector<1x16x128xf32> to vector<16x128xf32>
    %89 = vector.shape_cast %86 : vector<16x128xf32> to vector<1x16x128xf32>
    tpu.vector_store %arg6[%c1_68, %c0_69, %c0_70], %89 {strides = array<i32>} : memref<2x16x128xf32, #tpu.memory_space<vmem>>, vector<1x16x128xf32>,
    return
  }
}

</mosaic_0001>

<bundles_post_ra>
// kernel: conv_block_forward.2
= control target key start
LH: loop header
LB: loop body
LE: loop exit
PB: predicated region body
PF: predicated region fallthrough
CT: control target
= control target key end

     0   :  { %vm98_vm0 = vcmask 1043456   ;;  %v1205_v0 = vmov 0.0   ;;  %vm1206_vm1 = vmmov 0   ;;  %vm54_vm2 = vsmask.f32 7424  ;;  %s1528_s1 = inlined_call_operand.vmem [shape: bf16[3,72,128], index: 1, kind: input, shape index: {}]   ;;  %s1529_s0 = inlined_call_operand.vmem [shape: bf16[2,18,72], index: 0, kind: input, shape index: {}]   ;;  %s1530_s2 = inlined_call_operand.vmem [shape: f32[128,8], index: 2, kind: input, shape index: {}]   ;;  %s1531_s3 = inlined_call_operand.vmem [shape: f32[8,128], index: 3, kind: input, shape index: {}]   ;;  %s1532_s4 = inlined_call_operand.vmem [shape: f32[1,8], index: 4, kind: input, shape index: {}]   ;;  %s1533_s5 = inlined_call_operand.vmem [shape: f32[1,8], index: 5, kind: input, shape index: {}]   ;;  %s1534_s6 = inlined_call_operand.vmem [shape: bf16[2,16,128], index: 6, kind: output, shape index: {}]  }
   0x1   :  { %1016 = vmatprep.subr.bf16.mxu0 %v1205_v0  ;;  %1030 = vmatprep.subr.bf16.mxu1 %v1205_v0  ;;  %v1182_v1 = vld [vmem:[%s1528_s1 + $0x44] ss:$0 sps:$4 sm:$0xff]   ;;  %v1183_v2 = vld [vmem:[%s1528_s1 + $0x20] ss:$0 sps:$4 sm:$0xff]   ;;  %v1266_v6 = vld [vmem:[%s1528_s1 + $0x18] sm:$0xff]   ;;  %vm94_vm3 = vcmask 588800  }
   0x2   :  { %1026 = vmatprep.mubr.msk.bf16.mxu0 %vm1206_vm1, %v1205_v0  ;;  %1040 = vmatprep.mubr.msk.bf16.mxu1 %vm1206_vm1, %v1205_v0  ;;  %v100_v3 = vsel %vm98_vm0, %v1182_v1, 0  ;;  %v1256_v4 = vsel %vm98_vm0, %v1183_v2, 0  ;;  %v1184_v5 = vld [vmem:[%s1528_s1 + $0x3c] sm:$0xff]   ;;  %v1186_v7 = vld [vmem:[%s1528_s1 + $0x34] sm:$0xff]   ;;  %v25_v10 = vld [vmem:[%s1529_s0 + $0x4] sm:$0xf] }
   0x3   :  { %1017 = vmatpush3.bf16.msra.mxu0 %v100_v3  ;;  %1031 = vmatpush3.bf16.msra.mxu1 %v1256_v4  ;;  %v1277_v8 = vld [vmem:[%s1528_s1 + $0x10] sm:$0xff]   ;;  %v24_v9 = vld [vmem:[%s1529_s0] sm:$0xf]  ;;  %v1289_v12 = vld [vmem:[%s1529_s0 + $0x8] ss:$0 sps:$4 sm:$0x11]  }
   0x4   :  { %1018 = vmatprep.subr.bf16.mxu0 %v1205_v0  ;;  %1032 = vmatprep.subr.bf16.mxu1 %v1205_v0  ;;  %v879_v11 = vcombine.low %v24_v9, %v25_v10  ;;  %v1188_v13 = vld [vmem:[%s1528_s1 + $0x2c] sm:$0xff]   ;;  %v63_v17 = vshll.u32 %v1289_v12, 16  ;;  %v1190_v19 = vld [vmem:[%s1528_s1 + $0x24] sm:$0xff]   ;;  %v1196_v30 = vld [vmem:[%s1528_s1 + $0x58] sm:$0xff]   ;;  %v232_v41 = vrot.slane %v1289_v12, 1  ;;  %vm230_vm4 = vcmask 1046528  }
   0x5   :  { %v1299_v14 = vld [vmem:[%s1528_s1 + $0x8] sm:$0xff]   ;;  %v1311_v21 = vld [vmem:[%s1528_s1] sm:$0xff]   ;;  %v1328_v27 = vld [vmem:[%s1529_s0 + $0x10] sm:$0xf]  ;;  %vm678_vm5 = vcmask 64512  }
   0x6   :  { %v56_v15 = vshrl.u32 %v879_v11, 16  ;;  %v58_v16 = vshll.u32 %v879_v11, 16  ;;  %v65_v20 = vrot.slane %v63_v17, 1  ;;  %v1194_v23 = vld [vmem:[%s1528_s1 + $0x68] ss:$0 sps:$4 sm:$0xff]   ;;  %v1195_v28 = vld [vmem:[%s1528_s1 + $0x60] sm:$0xff]  }
   0x7   :  { %1019 = vmatpush3.bf16.msra.mxu0 %v1184_v5  ;;  %1033 = vmatpush3.bf16.msra.mxu1 %v1266_v6  ;;  %v265_v25 = vsel %vm98_vm0, %v1194_v23, 0  ;;  %v909_v26 = vld [vmem:[%s1529_s0 + $0xc] sm:$0xf]  ;;  %v216_v31 = vld [vmem:[%s1529_s0] sm:$0xe]  ;;  %v1197_v34 = vld [vmem:[%s1528_s1 + $0x50] sm:$0xff]  }
   0x8   :  { %1020 = vmatprep.subr.bf16.mxu0 %v1205_v0  ;;  %1034 = vmatprep.subr.bf16.mxu1 %v1205_v0  ;;  %v60_v18 = vrot.slane %v58_v16, 1  ;;  %v1337_v29 = vcombine.low %v909_v26, %v1328_v27  ;;  %v1201_v32 = vld [vmem:[%s1529_s0 + $0x14] ss:$0 sps:$4 sm:$0x11]   ;;  %v902_v35 = vcombine.low %v216_v31, %v25_v10  ;;  %v1198_v39 = vld [vmem:[%s1528_s1 + $0x48] sm:$0xff]   ;;  %v525_v51 = vld [vmem:[%s1530_s2 + $0x78] sm:$0xff] }
   0x9   :  { %v348_v38 = vshll.u32 %v1201_v32, 16  ;;  %v916_v46 = vld [vmem:[%s1529_s0 + $0xc] sm:$0xe]  ;;  %v444_v49 = vrot.slane %v1201_v32, 1  ;;  %v524_v52 = vld [vmem:[%s1530_s2 + $0x70] sm:$0xff]  ;;  %v522_v54 = vld [vmem:[%s1530_s2 + $0x60] sm:$0xff] }
   0xa   :  { %v61_v22 = vor.u32 %v60_v18, %v56_v15  ;;  %v343_v33 = vshll.u32 %v1337_v29, 16  ;;  %v341_v36 = vshrl.u32 %v1337_v29, 16  ;;  %v231_v40 = vrot.slane %v902_v35, 1  ;;  %v523_v53 = vld [vmem:[%s1530_s2 + $0x68] sm:$0xff]  ;;  %v521_v55 = vld [vmem:[%s1530_s2 + $0x58] sm:$0xff]  ;;  %v520_v56 = vld [vmem:[%s1530_s2 + $0x50] sm:$0xff] }
   0xb   :  { %1021 = vmatpush3.bf16.msra.mxu0 %v1186_v7  ;;  %1035 = vmatpush3.bf16.msra.mxu1 %v1277_v8  ;;  %v350_v43 = vrot.slane %v348_v38, 1  ;;  %v917_v47 = vcombine.low %v916_v46, %v1328_v27  ;;  %v519_v57 = vld [vmem:[%s1530_s2 + $0x48] sm:$0xff]  ;;  %v518_v58 = vld [vmem:[%s1530_s2 + $0x40] sm:$0xff]  ;;  %v517_v59 = vld [vmem:[%s1530_s2 + $0x38] sm:$0xff] }
   0xc   :  { %1022 = vmatprep.subr.bf16.mxu0 %v1205_v0  ;;  %1036 = vmatprep.subr.bf16.mxu1 %v1205_v0  ;;  %v66_v24 = vsel %vm54_vm2, %v61_v22, %v65_v20  ;;  %v345_v37 = vrot.slane %v343_v33, 1  ;;  %v233_v44 = vsel %vm230_vm4, %v231_v40, %v232_v41  ;;  %v516_v60 = vld [vmem:[%s1530_s2 + $0x30] sm:$0xff]  ;;  %v515_v61 = vld [vmem:[%s1530_s2 + $0x28] sm:$0xff]  ;;  %v514_v62 = vld [vmem:[%s1530_s2 + $0x20] sm:$0xff] }
   0xd   :  { %v443_v48 = vrot.slane %v917_v47, 1  ;;  %v513_v63 = vld [vmem:[%s1530_s2 + $0x18] sm:$0xff]  ;;  %v512_v1 = vld [vmem:[%s1530_s2 + $0x10] sm:$0xff]  ;;  %v511_v2 = vld [vmem:[%s1530_s2 + $0x8] sm:$0xff] }
   0xe   :  { %v346_v42 = vor.u32 %v345_v37, %v341_v36 }
   0xf   :  { %1023 = vmatpush3.bf16.msra.mxu0 %v1188_v13  ;;  %1037 = vmatpush3.bf16.msra.mxu1 %v1299_v14  ;;  %v445_v50 = vsel %vm230_vm4, %v443_v48, %v444_v49 }
  0x10   :  { %1024 = vmatprep.subr.bf16.mxu0 %v1205_v0  ;;  %1038 = vmatprep.subr.bf16.mxu1 %v1205_v0  ;;  %v351_v45 = vsel %vm54_vm2, %v346_v42, %v350_v43 }
  0x13   :  { %1025 = vmatpush3.bf16.msra.mxu0 %v1190_v19  ;;  %1039 = vmatpush3.bf16.msra.mxu1 %v1311_v21 }
  0x14   :  { %1044 = vmatprep.subr.bf16.mxu0 %v1205_v0  ;;  %1058 = vmatprep.subr.bf16.mxu1 %v1205_v0 }
  0x16   :  { %1027 = vmatmul.mubr.msk.bf16.vlgmr.msra.gmra.mxu0 %vm94_vm3, %v66_v24  ;;  %1041 = vmatmul.mubr.msk.bf16.vlgmr.msra.gmra.mxu1 %vm94_vm3, %v879_v11 }
  0x17   :  { %1045 = vmatpush3.bf16.msra.mxu0 %v265_v25  ;;  %1059 = vmatpush3.bf16.msra.mxu1 %v100_v3  ;;  %v510_v3 = vld [vmem:[%s1530_s2] sm:$0xff] }
  0x18   :  { %1046 = vmatprep.subr.bf16.mxu0 %v1205_v0  ;;  %1060 = vmatprep.subr.bf16.mxu1 %v1205_v0 }
  0x19   :  { %1054 = vmatprep.mubr.msk.bf16.mxu0 %vm1206_vm1, %v1205_v0  ;;  %1068 = vmatprep.mubr.msk.bf16.mxu1 %vm1206_vm1, %v1205_v0 }
  0x1b   :  { %1047 = vmatpush3.bf16.msra.mxu0 %v1195_v28  ;;  %1061 = vmatpush3.bf16.msra.mxu1 %v1184_v5 }
  0x1c   :  { %1048 = vmatprep.subr.bf16.mxu0 %v1205_v0  ;;  %1062 = vmatprep.subr.bf16.mxu1 %v1205_v0 }
  0x1f   :  { %1049 = vmatpush3.bf16.msra.mxu0 %v1196_v30  ;;  %1063 = vmatpush3.bf16.msra.mxu1 %v1186_v7 }
  0x20   :  { %1050 = vmatprep.subr.bf16.mxu0 %v1205_v0  ;;  %1064 = vmatprep.subr.bf16.mxu1 %v1205_v0 }
  0x23   :  { %1051 = vmatpush3.bf16.msra.mxu0 %v1197_v34  ;;  %1065 = vmatpush3.bf16.msra.mxu1 %v1188_v13 }
  0x24   :  { %1052 = vmatprep.subr.bf16.mxu0 %v1205_v0  ;;  %1066 = vmatprep.subr.bf16.mxu1 %v1205_v0 }
  0x27   :  { %1053 = vmatpush3.bf16.msra.mxu0 %v1198_v39  ;;  %1067 = vmatpush3.bf16.msra.mxu1 %v1190_v19 }
  0x28   :  { %1072 = vmatprep.subr.bf16.mxu0 %v1205_v0  ;;  %1086 = vmatprep.subr.bf16.mxu1 %v1205_v0 }
  0x2a   :  { %1055 = vmatmul.mubr.msk.bf16.vlgmr.msra.gmra.mxu0 %vm94_vm3, %v233_v44  ;;  %1069 = vmatmul.mubr.msk.bf16.vlgmr.msra.gmra.mxu1 %vm94_vm3, %v351_v45 }
  0x2b   :  { %1073 = vmatpush3.bf16.msra.mxu0 %v1256_v4  ;;  %1087 = vmatpush3.bf16.msra.mxu1 %v265_v25 }
  0x2c   :  { %1074 = vmatprep.subr.bf16.mxu0 %v1205_v0  ;;  %1088 = vmatprep.subr.bf16.mxu1 %v1205_v0 }
  0x2d   :  { %1082 = vmatprep.mubr.msk.bf16.mxu0 %vm1206_vm1, %v1205_v0  ;;  %1096 = vmatprep.mubr.msk.bf16.mxu1 %vm1206_vm1, %v1205_v0 }
  0x2f   :  { %1075 = vmatpush3.bf16.msra.mxu0 %v1266_v6  ;;  %1089 = vmatpush3.bf16.msra.mxu1 %v1195_v28 }
  0x30   :  { %1076 = vmatprep.subr.bf16.mxu0 %v1205_v0  ;;  %1090 = vmatprep.subr.bf16.mxu1 %v1205_v0 }
  0x33   :  { %1077 = vmatpush3.bf16.msra.mxu0 %v1277_v8  ;;  %1091 = vmatpush3.bf16.msra.mxu1 %v1196_v30 }
  0x34   :  { %1078 = vmatprep.subr.bf16.mxu0 %v1205_v0  ;;  %1092 = vmatprep.subr.bf16.mxu1 %v1205_v0 }
  0x37   :  { %1079 = vmatpush3.bf16.msra.mxu0 %v1299_v14  ;;  %1093 = vmatpush3.bf16.msra.mxu1 %v1197_v34 }
  0x38   :  { %1080 = vmatprep.subr.bf16.mxu0 %v1205_v0  ;;  %1094 = vmatprep.subr.bf16.mxu1 %v1205_v0 }
  0x3b   :  { %1081 = vmatpush3.bf16.msra.mxu0 %v1311_v21  ;;  %1095 = vmatpush3.bf16.msra.mxu1 %v1198_v39 }
  0x3c   :  { %1100 = vmatprep.subr.mxu0 %v1205_v0  ;;  %1135 = vmatprep.subr.mxu1 %v1205_v0 }
  0x3e   :  { %1083 = vmatmul.mubr.msk.bf16.vlgmr.msra.gmra.mxu0 %vm94_vm3, %v1337_v29  ;;  %1097 = vmatmul.mubr.msk.bf16.vlgmr.msra.gmra.mxu1 %vm94_vm3, %v445_v50 }
  0x3f   :  { %1132 = vmatprep.mubr.msk.f32.mxu0 %vm1206_vm1, %v1205_v0  ;;  %1167 = vmatprep.mubr.msk.f32.mxu1 %vm1206_vm1, %v1205_v0 }
  0x40   :  { %1101 = vmatpush3.msra.mxu0 %v525_v51  ;;  %1136 = vmatpush3.msra.mxu1 %v525_v51 }
  0x41   :  { %1102 = vmatprep.subr.mxu0 %v1205_v0  ;;  %1137 = vmatprep.subr.mxu1 %v1205_v0 }
  0x42   :  { %1103 = vmatpush3.msra.mxu0 %v524_v52  ;;  %1138 = vmatpush3.msra.mxu1 %v524_v52 }
  0x43   :  { %1104 = vmatprep.subr.mxu0 %v1205_v0  ;;  %1139 = vmatprep.subr.mxu1 %v1205_v0 }
  0x44   :  { %1105 = vmatpush3.msra.mxu0 %v523_v53  ;;  %1140 = vmatpush3.msra.mxu1 %v523_v53 }
  0x45   :  { %1106 = vmatprep.subr.mxu0 %v1205_v0  ;;  %1141 = vmatprep.subr.mxu1 %v1205_v0 }
  0x46   :  { %1107 = vmatpush3.msra.mxu0 %v522_v54  ;;  %1142 = vmatpush3.msra.mxu1 %v522_v54 }
  0x47   :  { %1108 = vmatprep.subr.mxu0 %v1205_v0  ;;  %1143 = vmatprep.subr.mxu1 %v1205_v0 }
  0x48   :  { %1109 = vmatpush3.msra.mxu0 %v521_v55  ;;  %1144 = vmatpush3.msra.mxu1 %v521_v55 }
  0x49   :  { %1110 = vmatprep.subr.mxu0 %v1205_v0  ;;  %1145 = vmatprep.subr.mxu1 %v1205_v0 }
  0x4a   :  { %1111 = vmatpush3.msra.mxu0 %v520_v56  ;;  %1146 = vmatpush3.msra.mxu1 %v520_v56 }
  0x4b   :  { %1112 = vmatprep.subr.mxu0 %v1205_v0  ;;  %1147 = vmatprep.subr.mxu1 %v1205_v0 }
  0x4c   :  { %1113 = vmatpush3.msra.mxu0 %v519_v57  ;;  %1148 = vmatpush3.msra.mxu1 %v519_v57 }
  0x4d   :  { %1114 = vmatprep.subr.mxu0 %v1205_v0  ;;  %1149 = vmatprep.subr.mxu1 %v1205_v0 }
  0x4e   :  { %1115 = vmatpush3.msra.mxu0 %v518_v58  ;;  %1150 = vmatpush3.msra.mxu1 %v518_v58 }
  0x4f   :  { %1116 = vmatprep.subr.mxu0 %v1205_v0  ;;  %1151 = vmatprep.subr.mxu1 %v1205_v0 }
  0x50   :  { %1117 = vmatpush3.msra.mxu0 %v517_v59  ;;  %1152 = vmatpush3.msra.mxu1 %v517_v59 }
  0x51   :  { %1118 = vmatprep.subr.mxu0 %v1205_v0  ;;  %1153 = vmatprep.subr.mxu1 %v1205_v0 }
  0x52   :  { %1119 = vmatpush3.msra.mxu0 %v516_v60  ;;  %1154 = vmatpush3.msra.mxu1 %v516_v60 }
  0x53   :  { %1120 = vmatprep.subr.mxu0 %v1205_v0  ;;  %1155 = vmatprep.subr.mxu1 %v1205_v0 }
  0x54   :  { %1121 = vmatpush3.msra.mxu0 %v515_v61  ;;  %1156 = vmatpush3.msra.mxu1 %v515_v61 }
  0x55   :  { %1122 = vmatprep.subr.mxu0 %v1205_v0  ;;  %1157 = vmatprep.subr.mxu1 %v1205_v0 }
  0x56   :  { %1123 = vmatpush3.msra.mxu0 %v514_v62  ;;  %1158 = vmatpush3.msra.mxu1 %v514_v62 }
  0x57   :  { %1124 = vmatprep.subr.mxu0 %v1205_v0  ;;  %1159 = vmatprep.subr.mxu1 %v1205_v0 }
  0x58   :  { %1125 = vmatpush3.msra.mxu0 %v513_v63  ;;  %1160 = vmatpush3.msra.mxu1 %v513_v63 }
  0x59   :  { %1126 = vmatprep.subr.mxu0 %v1205_v0  ;;  %1161 = vmatprep.subr.mxu1 %v1205_v0 }
  0x5a   :  { %1127 = vmatpush3.msra.mxu0 %v512_v1  ;;  %1162 = vmatpush3.msra.mxu1 %v512_v1 }
  0x5b   :  { %1128 = vmatprep.subr.mxu0 %v1205_v0  ;;  %1163 = vmatprep.subr.mxu1 %v1205_v0 }
  0x5c   :  { %1129 = vmatpush3.msra.mxu0 %v511_v2  ;;  %1164 = vmatpush3.msra.mxu1 %v511_v2 }
  0x5d   :  { %1130 = vmatprep.subr.mxu0 %v1205_v0  ;;  %1165 = vmatprep.subr.mxu1 %v1205_v0 }
  0x5e   :  { %1131 = vmatpush3.msra.mxu0 %v510_v3  ;;  %1166 = vmatpush3.msra.mxu1 %v510_v3 }
  0x5f   :  { %1170 = vmatprep.subr.mxu0 %v1205_v0  ;;  %1175 = vmatprep.subr.mxu1 %v1205_v0 }
  0xd6   :  { %v136_v4 = vpop.f32.mrf.mxu0  ;;  %v209_v5 = vpop.f32.mrf.mxu1 }
  0xd7   :  { %v210_v21 = vadd.f32 %v209_v5, %v136_v4 }
  0xd8   :  { %v1028_v6 = vpop.f32.mrf.mxu0  ;;  %v1042_v7 = vpop.f32.mrf.mxu1 }
  0xd9   :  { %v677_v7 = vld [vmem:[%s1531_s3] sm:$0xff] }
  0xda   :  { %v139_v8 = vpop.f32.mrf.mxu0  ;;  %v212_v9 = vpop.f32.mrf.mxu1 }
  0xdb   :  { %v213_v20 = vadd.f32 %v212_v9, %v139_v8 }
  0xdc   :  { %v1029_v10 = vpop.f32.mrf.mxu0  ;;  %v1043_v11 = vpop.f32.mrf.mxu1 }
  0xea   :  { %v301_v12 = vpop.f32.mrf.mxu0  ;;  %v389_v13 = vpop.f32.mrf.mxu1 }
  0xeb   :  { %v1487_v23 = vadd.f32 %v301_v12, %v210_v21 }
  0xec   :  { %v1056_v14 = vpop.f32.mrf.mxu0  ;;  %v1070_v15 = vpop.f32.mrf.mxu1 }
  0xed   :  { %v318_v25 = vmul.f32 %v1487_v23, %v1487_v23 }
  0xee   :  { %v304_v16 = vpop.f32.mrf.mxu0  ;;  %v392_v17 = vpop.f32.mrf.mxu1 }
  0xef   :  { %v1485_v22 = vadd.f32 %v304_v16, %v213_v20 }
  0xf0   :  { %v1057_v18 = vpop.f32.mrf.mxu0  ;;  %v1071_v19 = vpop.f32.mrf.mxu1 }
  0xf1   :  { %v319_v24 = vmul.f32 %v1485_v22, %v1485_v22  ;;  %v310_v26 = vadd.f32 %v1485_v22, %v1487_v23  ;;  %v674_v19 = vld [vmem:[%s1533_s5] sm:$0x1] }
  0xf3   :  { %v320_v27 = vadd.f32 %v319_v24, %v318_v25  ;;  %v311_v29 = vrot.slane %v310_v26, 4  ;;  %v825_v24 = vlaneseq }
  0xf5   :  { %v321_v33 = vrot.slane %v320_v27, 4  ;;  %v312_v36 = vadd.f32 %v311_v29, %v310_v26  ;;  %v826_v25 = vshrl.u32 %v825_v24, 7 }
  0xf7   :  { %v322_v41 = vadd.f32 %v321_v33, %v320_v27  ;;  %v313_v44 = vrot.slane %v312_v36, 2  ;;  %v827_v26 = vsub.s32 0, %v826_v25 }
  0xf9   :  { %v323_v48 = vrot.slane %v322_v41, 2  ;;  %v314_v51 = vadd.f32 %v313_v44, %v312_v36 }
  0xfb   :  { %v324_v54 = vadd.f32 %v323_v48, %v322_v41  ;;  %v315_v57 = vrot.slane %v314_v51, 1 }
  0xfd   :  { %v325_v62 = vrot.slane %v324_v54, 1  ;;  %v316_v63 = vadd.f32 %v315_v57, %v314_v51 }
  0xfe   :  { %v432_v28 = vpop.f32.mrf.mxu0  ;;  %v483_v31 = vpop.f32.mrf.mxu1 }
  0xff   :  { %v433_v30 = vadd.f32 %v432_v28, %v389_v13  ;;  %v326_v4 = vadd.f32 %v325_v62, %v324_v54 }
 0x100   :  { %v1084_v32 = vpop.f32.mrf.mxu0  ;;  %v1098_v34 = vpop.f32.mrf.mxu1 }
 0x101   :  { %v1495_v37 = vadd.f32 %v483_v31, %v433_v30 }
 0x102   :  { %v435_v35 = vpop.f32.mrf.mxu0  ;;  %v486_v39 = vpop.f32.mrf.mxu1 }
 0x103   :  { %v436_v38 = vadd.f32 %v435_v35, %v392_v17  ;;  %v500_v45 = vmul.f32 %v1495_v37, %v1495_v37 }
 0x104   :  { %v1085_v40 = vpop.f32.mrf.mxu0  ;;  %v1099_v43 = vpop.f32.mrf.mxu1 }
 0x105   :  { %v1497_v42 = vadd.f32 %v486_v39, %v436_v38 }
 0x107   :  { %v492_v46 = vadd.f32 %v1497_v42, %v1495_v37  ;;  %v501_v47 = vmul.f32 %v1497_v42, %v1497_v42 }
 0x109   :  { %v493_v49 = vrot.slane %v492_v46, 4  ;;  %v502_v50 = vadd.f32 %v501_v47, %v500_v45 }
 0x10b   :  { %v494_v52 = vadd.f32 %v493_v49, %v492_v46  ;;  %v503_v53 = vrot.slane %v502_v50, 4 }
 0x10d   :  { %v495_v55 = vrot.slane %v494_v52, 2  ;;  %v504_v56 = vadd.f32 %v503_v53, %v502_v50 }
 0x10f   :  { %v496_v58 = vadd.f32 %v495_v55, %v494_v52  ;;  %v505_v59 = vrot.slane %v504_v56, 2 }
 0x111   :  { %v497_v60 = vrot.slane %v496_v58, 1  ;;  %v506_v61 = vadd.f32 %v505_v59, %v504_v56 }
 0x113   :  { %v498_v1 = vadd.f32 %v497_v60, %v496_v58  ;;  %v507_v2 = vrot.slane %v506_v61, 1 }
 0x115   :  { %v499_v3 = vadd.f32 %v498_v1, %v316_v63  ;;  %v508_v5 = vadd.f32 %v507_v2, %v506_v61 }
 0x117   :  { %1133 = vmatmul.mubr.f32.vlgmr.msra.gmra.mxu0 %v499_v3  ;;  %v509_v6 = vadd.f32 %v508_v5, %v326_v4 }
 0x118   :  { %1172 = vmatprep.mubr.msk.f32.mxu0 %vm1206_vm1, %v1205_v0  ;;  %1171 = vmatpush3.msra.mxu0 %v677_v7 }
 0x119   :  { %1168 = vmatmul.mubr.f32.vlgmr.msra.gmra.mxu1 %v509_v6 }
 0x11a   :  { %1177 = vmatprep.mubr.msk.f32.mxu1 %vm1206_vm1, %v1205_v0  ;;  %1176 = vmatpush3.msra.mxu1 %v677_v7  ;;  %v672_v0 = vld [vmem:[%s1532_s4] sm:$0x1] }
 0x1d7   :  { %v592_v8 = vpop.f32.mrf.mxu0 }
 0x1d8   :  { %v666_v9 = vmul.f32 0.001953125, %v592_v8 }
 0x1d9   :  { %v1134_v10 = vpop.f32.mrf.mxu0  ;;  %v662_v11 = vpop.f32.mrf.mxu1 }
 0x1da   :  { %v668_v12 = vmul.f32 %v666_v9, %v666_v9  ;;  %v667_v13 = vmul.f32 0.001953125, %v662_v11 }
 0x1db   :  { %v1169_v14 = vpop.f32.mrf.mxu1 }
 0x1dc   :  { %v669_v15 = vsub.f32 %v667_v13, %v668_v12 }
 0x1de   :  { %v670_v16 = vadd.f32 1e-05, %v669_v15 }
 0x1e0   :  { %1203 = vrsqrt.f32 %v670_v16 }
 0x1ed   :  { %v1204_v17 = vpop.eup %1203 }
 0x1ee   :  { %v673_v18 = vmul.f32 %v1204_v17, %v672_v0 }
 0x1f0   :  { %1173 = vmatmul.mubr.msk.f32.vlgmr.msra.gmra.mxu0 %vm678_vm5, %v673_v18  ;;  %v675_v20 = vmul.f32 %v673_v18, %v666_v9 }
 0x1f2   :  { %v676_v21 = vsub.f32 %v674_v19, %v675_v20 }
 0x1f4   :  { %1178 = vmatmul.mubr.msk.f32.vlgmr.msra.gmra.mxu1 %vm678_vm5, %v676_v21 }
 0x2b0   :  { %v748_v27 = vpop.f32.mrf.mxu0 }
 0x2b1   :  { %v828_v28 = vrot.slane %v748_v27, %v827_v26 }
 0x2b2   :  { %v1174_v29 = vpop.f32.mrf.mxu0 }
 0x2b3   :  { %v829_v30 = vmul.f32 %v828_v28, %v1487_v23  ;;  %v830_v32 = vmul.f32 %v828_v28, %v1485_v22  ;;  %v849_v33 = vmul.f32 %v828_v28, %v1495_v37  ;;  %v850_v34 = vmul.f32 %v828_v28, %v1497_v42 }
 0x2b4   :  { %v821_v31 = vpop.f32.mrf.mxu1 }
 0x2b5   :  { %v834_v35 = vrot.slane %v821_v31, %v827_v26 }
 0x2b6   :  { %v1179_v36 = vpop.f32.mrf.mxu1 }
 0x2b7   :  { %v835_v38 = vadd.f32 %v834_v35, %v829_v30  ;;  %v836_v39 = vadd.f32 %v834_v35, %v830_v32  ;;  %v851_v40 = vadd.f32 %v849_v33, %v834_v35  ;;  %v852_v41 = vadd.f32 %v850_v34, %v834_v35 }
 0x2b9   :  { %v837_v43 = vmax.f32 %v835_v38, 0.0  ;;  %v838_v44 = vmax.f32 %v836_v39, 0.0  ;;  %v853_v45 = vmax.f32 %v851_v40, 0.0  ;;  %v854_v46 = vmax.f32 %v852_v41, 0.0 }
 0x2bb   :  { %v934_v47 = vpack.c.bf16 %v838_v44, %v837_v43  ;;  %v939_v48 = vpack.c.bf16 %v854_v46, %v853_v45 }
 0x2bd   :  { %935 = vst [vmem:[%s1534_s6] sm:$0xff] %v934_v47   ;;  %941 = vst [vmem:[%s1534_s6 + $0x8] sm:$0xff] %v939_v48  }

// kernel: conv_block_forward.3
= control target key start
LH: loop header
LB: loop body
LE: loop exit
PB: predicated region body
PF: predicated region fallthrough
CT: control target
= control target key end

     0   :  { %v1253_v0 = vmov 0   ;;  %vm157_vm0 = vcmask 130048   ;;  %vm77_vm1 = vsmask.f32 7424  ;;  %vm325_vm2 = vcmask 1046528   ;;  %s1753_s1 = inlined_call_operand.vmem [shape: bf16[3,144,128], index: 1, kind: input, shape index: {}]   ;;  %s1754_s0 = inlined_call_operand.vmem [shape: bf16[2,18,144], index: 0, kind: input, shape index: {}]   ;;  %s1755_s2 = inlined_call_operand.vmem [shape: f32[128,8], index: 2, kind: input, shape index: {}]   ;;  %s1756_s3 = inlined_call_operand.vmem [shape: f32[8,128], index: 3, kind: input, shape index: {}]   ;;  %s1757_s4 = inlined_call_operand.vmem [shape: f32[1,8], index: 4, kind: input, shape index: {}]   ;;  %s1758_s5 = inlined_call_operand.vmem [shape: f32[1,8], index: 5, kind: input, shape index: {}]   ;;  %s1759_s6 = inlined_call_operand.vmem [shape: f32[2,16,128], index: 6, kind: output, shape index: {}]  }
   0x1   :  { %161 = vmatprep.subr.bf16.mxu0 %v1253_v0  ;;  %259 = vmatprep.subr.bf16.mxu1 %v1253_v0  ;;  %v1296_v1 = vld [vmem:[%s1753_s1 + $0x80] sm:$0xff]   ;;  %v1301_v2 = vld [vmem:[%s1753_s1 + $0x38] sm:$0xff]   ;;  %v1314_v4 = vld [vmem:[%s1753_s1 + $0x30] sm:$0xff]   ;;  %vm1255_vm3 = vmmov 0   ;;  %vm826_vm4 = vcmask 64512  }
   0x2   :  { %162 = vmatpush1.bf16.msra.mxu0 %v1296_v1  ;;  %v1307_v3 = vld [vmem:[%s1753_s1 + $0x78] sm:$0xff]   ;;  %260 = vmatpush1.bf16.msra.mxu1 %v1301_v2  ;;  %v1321_v5 = vld [vmem:[%s1753_s1 + $0x70] sm:$0xff]   ;;  %v1328_v6 = vld [vmem:[%s1753_s1 + $0x28] sm:$0xff]  }
   0x3   :  { %163 = vmatprep.subr.bf16.mxu0 %v1253_v0  ;;  %261 = vmatprep.subr.bf16.mxu1 %v1253_v0  ;;  %v1335_v7 = vld [vmem:[%s1753_s1 + $0x68] sm:$0xff]   ;;  %v1342_v8 = vld [vmem:[%s1753_s1 + $0x20] sm:$0xff]   ;;  %v1356_v10 = vld [vmem:[%s1753_s1 + $0x18] sm:$0xff]  }
   0x4   :  { %v1349_v9 = vld [vmem:[%s1753_s1 + $0x60] sm:$0xff]   ;;  %v1362_v11 = vld [vmem:[%s1753_s1 + $0x58] sm:$0xff]   ;;  %v1371_v13 = vld [vmem:[%s1754_s0 + $0x8] sm:$0xff] }
   0x5   :  { %v24_v12 = vld [vmem:[%s1754_s0] sm:$0xff]  ;;  %v44_v14 = vld [vmem:[%s1754_s0 + $0x10] sm:$0x11]  ;;  %v1401_v23 = vld [vmem:[%s1753_s1 + $0x8] sm:$0xff]  }
   0x6   :  { %164 = vmatpush1.bf16.msra.mxu0 %v1307_v3  ;;  %262 = vmatpush1.bf16.msra.mxu1 %v1314_v4  ;;  %v1381_v15 = vld [vmem:[%s1753_s1 + $0x10] sm:$0xff]   ;;  %v1021_v16 = vcombine.high %v24_v12, %v1371_v13  ;;  %v1384_v17 = vcombine.high %v44_v14, %v44_v14  ;;  %v1387_v18 = vcombine.low %v24_v12, %v1371_v13  ;;  %v1412_v28 = vld [vmem:[%s1753_s1 + $0x48] sm:$0xff]   ;;  %v1422_v33 = vld [vmem:[%s1753_s1] sm:$0xff]  }
   0x7   :  { %165 = vmatprep.subr.bf16.mxu0 %v1253_v0  ;;  %263 = vmatprep.subr.bf16.mxu1 %v1253_v0  ;;  %v1396_v22 = vld [vmem:[%s1753_s1 + $0x50] sm:$0xff]   ;;  %v1403_v24 = vcombine.low %v44_v14, %v44_v14  ;;  %v1430_v35 = vld [vmem:[%s1754_s0] sm:$0xee]  ;;  %v1435_v36 = vld [vmem:[%s1754_s0 + $0x18] sm:$0xff] }
   0x8   :  { %v91_v19 = vshrl.u32 %v1021_v16, 16  ;;  %v93_v20 = vshll.u32 %v1021_v16, 16  ;;  %v98_v21 = vshll.u32 %v1384_v17, 16  ;;  %1043 = vmatprep.mubr.msk.bf16.mxu1 %vm157_vm0, %v1021_v16  ;;  %v81_v25 = vshll.u32 %v1387_v18, 16  ;;  %v1441_v37 = vld [vmem:[%s1753_s1 + $0x88] sm:$0xff]   ;;  %v1448_v41 = vld [vmem:[%s1754_s0 + $0x20] sm:$0xff] }
   0x9   :  { %v79_v30 = vshrl.u32 %v1387_v18, 16  ;;  %v86_v32 = vshll.u32 %v1403_v24, 16  ;;  %v1063_v40 = vcombine.high %v1430_v35, %v1371_v13  ;;  %v1076_v42 = vld [vmem:[%s1754_s0 + $0x28] sm:$0x11]  ;;  %v1458_v43 = vld [vmem:[%s1753_s1 + $0x40] sm:$0xff]   ;;  %v1462_v44 = vcombine.high %v1435_v36, %v1448_v41  ;;  %v1512_v14 = vld [vmem:[%s1753_s1 + $0xb8] sm:$0xff]  }
   0xa   :  { %166 = vmatpush1.bf16.msra.mxu0 %v1321_v5  ;;  %264 = vmatpush1.bf16.msra.mxu1 %v1328_v6  ;;  %v95_v26 = vrot.slane %v93_v20, 1  ;;  %v100_v27 = vrot.slane %v98_v21, 1  ;;  %v83_v31 = vrot.slane %v81_v25, 1  ;;  %v1464_v45 = vcombine.high %v1076_v42, %v1076_v42  ;;  %v1474_v51 = vld [vmem:[%s1754_s0 + $0x18] sm:$0xee]  ;;  %v1481_v53 = vld [vmem:[%s1753_s1 + $0xc8] sm:$0xff]  }
   0xb   :  { %167 = vmatprep.subr.bf16.mxu0 %v1253_v0  ;;  %265 = vmatprep.subr.bf16.mxu1 %v1253_v0  ;;  %v88_v39 = vrot.slane %v86_v32, 1  ;;  %v330_v46 = vrot.slane %v1384_v17, 1  ;;  %v329_v47 = vrot.slane %v1063_v40, 1  ;;  %v481_v48 = vshrl.u32 %v1462_v44, 16  ;;  %v1497_v61 = vld [vmem:[%s1753_s1 + $0xc0] sm:$0xff]   ;;  %v1241_v17 = vld [vmem:[%s1753_s1 + $0x90] sm:$0xff]  }
   0xc   :  { %v96_v29 = vor.u32 %v95_v26, %v91_v19  ;;  %v84_v38 = vor.u32 %v83_v31, %v79_v30  ;;  %v483_v49 = vshll.u32 %v1462_v44, 16  ;;  %v488_v50 = vshll.u32 %v1464_v45, 16  ;;  %v1242_v21 = vld [vmem:[%s1753_s1 + $0xd0] sm:$0xff]   ;;  %v666_v32 = vld [vmem:[%s1755_s2 + $0x40] sm:$0xff] }
   0xd   :  { %v1483_v54 = vcombine.low %v1076_v42, %v1076_v42  ;;  %v1084_v57 = vcombine.low %v1474_v51, %v1448_v41  ;;  %v331_v59 = vsel %vm325_vm2, %v329_v47, %v330_v46  ;;  %v1545_v16 = vcombine.low %v1435_v36, %v1448_v41  ;;  %v662_v36 = vld [vmem:[%s1755_s2 + $0x20] sm:$0xff] }
   0xe   :  { %168 = vmatpush1.bf16.msra.mxu0 %v1335_v7  ;;  %266 = vmatpush1.bf16.msra.mxu1 %v1342_v8  ;;  %v101_v34 = vsel %vm77_vm1, %v96_v29, %v100_v27  ;;  %v89_v52 = vsel %vm77_vm1, %v84_v38, %v88_v39  ;;  %v485_v55 = vrot.slane %v483_v49, 1  ;;  %v490_v56 = vrot.slane %v488_v50, 1  ;;  %v660_v38 = vld [vmem:[%s1755_s2 + $0x10] sm:$0xff]  ;;  %v659_v39 = vld [vmem:[%s1755_s2 + $0x8] sm:$0xff]  ;;  %v658_v40 = vld [vmem:[%s1755_s2] sm:$0xff] }
   0xf   :  { %169 = vmatprep.subr.bf16.mxu0 %v1253_v0  ;;  %267 = vmatprep.subr.bf16.mxu1 %v1253_v0  ;;  %v588_v58 = vrot.slane %v1483_v54, 1  ;;  %v587_v62 = vrot.slane %v1084_v57, 1  ;;  %v476_v20 = vshll.u32 %v1483_v54, 16  ;;  %v327_v26 = vrot.slane %v1403_v24, 1 }
  0x10   :  { %1033 = vmatprep.mubr.msk.bf16.mxu0 %vm157_vm0, %v101_v34  ;;  %v486_v60 = vor.u32 %v485_v55, %v481_v48  ;;  %v591_v31 = vrot.slane %v1464_v45, 1  ;;  %v664_v34 = vld [vmem:[%s1755_s2 + $0x30] sm:$0xff] }
  0x11   :  { %v1505_v12 = vsel %vm325_vm2, %v587_v62, %v588_v58  ;;  %v478_v27 = vrot.slane %v476_v20, 1 }
  0x12   :  { %170 = vmatpush1.bf16.msra.mxu0 %v1349_v9  ;;  %268 = vmatpush1.bf16.msra.mxu1 %v1356_v10  ;;  %v491_v63 = vsel %vm77_vm1, %v486_v60, %v490_v56 }
  0x13   :  { %171 = vmatprep.subr.bf16.mxu0 %v1253_v0  ;;  %269 = vmatprep.subr.bf16.mxu1 %v1253_v0 }
  0x16   :  { %172 = vmatpush1.bf16.msra.mxu0 %v1362_v11  ;;  %270 = vmatpush1.bf16.msra.mxu1 %v1381_v15 }
  0x17   :  { %173 = vmatprep.subr.bf16.mxu0 %v1253_v0  ;;  %271 = vmatprep.subr.bf16.mxu1 %v1253_v0 }
  0x1a   :  { %174 = vmatpush1.bf16.msra.mxu0 %v1396_v22  ;;  %272 = vmatpush1.bf16.msra.mxu1 %v1401_v23 }
  0x1b   :  { %175 = vmatprep.subr.bf16.mxu0 %v1253_v0  ;;  %273 = vmatprep.subr.bf16.mxu1 %v1253_v0 }
  0x1e   :  { %176 = vmatpush1.bf16.msra.mxu0 %v1412_v28  ;;  %274 = vmatpush1.bf16.msra.mxu1 %v1422_v33 }
  0x1f   :  { %191 = vmatprep.subr.bf16.mxu0 %v1253_v0  ;;  %289 = vmatprep.subr.bf16.mxu1 %v1253_v0 }
  0x22   :  { %192 = vmatpush2.bf16.msra.mxu0 %v1441_v37  ;;  %290 = vmatpush2.bf16.msra.mxu1 %v1458_v43 }
  0x23   :  { %390 = vmatprep.subr.bf16.mxu0 %v1253_v0  ;;  %496 = vmatprep.subr.bf16.mxu1 %v1253_v0 }
  0x25   :  { %194 = vmatmul.mubr.bf16.vlgmr.msra.gmra.mxu0 %v89_v52  ;;  %292 = vmatmul.mubr.bf16.vlgmr.msra.gmra.mxu1 %v1387_v18  ;;  %v1062_v18 = vcombine.low %v1430_v35, %v1371_v13  ;;  %v1085_v13 = vcombine.high %v1474_v51, %v1448_v41  ;;  %v663_v35 = vld [vmem:[%s1755_s2 + $0x28] sm:$0xff] }
  0x26   :  { %391 = vmatpush1.bf16.msra.mxu0 %v1481_v53  ;;  %497 = vmatpush1.bf16.msra.mxu1 %v1296_v1  ;;  %v1521_v1 = vld [vmem:[%s1753_s1 + $0xb0] sm:$0xff]  }
  0x27   :  { %392 = vmatprep.subr.bf16.mxu0 %v1253_v0  ;;  %498 = vmatprep.subr.bf16.mxu1 %v1253_v0  ;;  %v326_v25 = vrot.slane %v1062_v18, 1  ;;  %v590_v30 = vrot.slane %v1085_v13, 1 }
  0x28   :  { %1073 = vmatprep.mubr.msk.bf16.mxu0 %vm157_vm0, %v331_v59  ;;  %1081 = vmatprep.mubr.msk.bf16.mxu1 %vm157_vm0, %v491_v63 }
  0x29   :  { %v328_v29 = vsel %vm325_vm2, %v326_v25, %v327_v26 }
  0x2a   :  { %393 = vmatpush1.bf16.msra.mxu0 %v1497_v61  ;;  %499 = vmatpush1.bf16.msra.mxu1 %v1307_v3  ;;  %v1530_v3 = vld [vmem:[%s1753_s1 + $0xa8] sm:$0xff]  }
  0x2b   :  { %394 = vmatprep.subr.bf16.mxu0 %v1253_v0  ;;  %500 = vmatprep.subr.bf16.mxu1 %v1253_v0 }
  0x2e   :  { %395 = vmatpush1.bf16.msra.mxu0 %v1512_v14  ;;  %501 = vmatpush1.bf16.msra.mxu1 %v1321_v5  ;;  %v1539_v5 = vld [vmem:[%s1753_s1 + $0xa0] sm:$0xff]  }
  0x2f   :  { %396 = vmatprep.subr.bf16.mxu0 %v1253_v0  ;;  %502 = vmatprep.subr.bf16.mxu1 %v1253_v0 }
  0x32   :  { %397 = vmatpush1.bf16.msra.mxu0 %v1521_v1  ;;  %503 = vmatpush1.bf16.msra.mxu1 %v1335_v7  ;;  %v1240_v7 = vld [vmem:[%s1753_s1 + $0x98] sm:$0xff]  }
  0x33   :  { %398 = vmatprep.subr.bf16.mxu0 %v1253_v0  ;;  %504 = vmatprep.subr.bf16.mxu1 %v1253_v0 }
  0x36   :  { %399 = vmatpush1.bf16.msra.mxu0 %v1530_v3  ;;  %505 = vmatpush1.bf16.msra.mxu1 %v1349_v9  ;;  %v471_v9 = vshll.u32 %v1545_v16, 16 }
  0x37   :  { %400 = vmatprep.subr.bf16.mxu0 %v1253_v0  ;;  %506 = vmatprep.subr.bf16.mxu1 %v1253_v0 }
  0x38   :  { %v473_v19 = vrot.slane %v471_v9, 1 }
  0x3a   :  { %401 = vmatpush1.bf16.msra.mxu0 %v1539_v5  ;;  %507 = vmatpush1.bf16.msra.mxu1 %v1362_v11  ;;  %v469_v11 = vshrl.u32 %v1545_v16, 16 }
  0x3b   :  { %402 = vmatprep.subr.bf16.mxu0 %v1253_v0  ;;  %508 = vmatprep.subr.bf16.mxu1 %v1253_v0 }
  0x3e   :  { %403 = vmatpush1.bf16.msra.mxu0 %v1240_v7  ;;  %509 = vmatpush1.bf16.msra.mxu1 %v1396_v22  ;;  %v474_v22 = vor.u32 %v473_v19, %v469_v11 }
  0x3f   :  { %404 = vmatprep.subr.bf16.mxu0 %v1253_v0  ;;  %510 = vmatprep.subr.bf16.mxu1 %v1253_v0 }
  0x40   :  { %v479_v24 = vsel %vm77_vm1, %v474_v22, %v478_v27 }
  0x42   :  { %405 = vmatpush1.bf16.msra.mxu0 %v1241_v17  ;;  %511 = vmatpush1.bf16.msra.mxu1 %v1412_v28  ;;  %v592_v28 = vsel %vm325_vm2, %v590_v30, %v591_v31 }
  0x43   :  { %420 = vmatprep.subr.bf16.mxu0 %v1253_v0  ;;  %526 = vmatprep.subr.bf16.mxu1 %v1253_v0 }
  0x46   :  { %421 = vmatpush2.bf16.msra.mxu0 %v1242_v21  ;;  %527 = vmatpush2.bf16.msra.mxu1 %v1441_v37  ;;  %v661_v37 = vld [vmem:[%s1755_s2 + $0x18] sm:$0xff] }
  0x47   :  { %540 = vmatprep.subr.bf16.mxu0 %v1253_v0  ;;  %597 = vmatprep.subr.bf16.mxu1 %v1253_v0 }
  0x49   :  { %423 = vmatmul.mubr.bf16.vlgmr.msra.gmra.mxu0 %v328_v29  ;;  %529 = vmatmul.mubr.bf16.vlgmr.msra.gmra.mxu1 %v479_v24 }
  0x4a   :  { %541 = vmatpush1.bf16.msra.mxu0 %v1301_v2  ;;  %598 = vmatpush1.bf16.msra.mxu1 %v1481_v53  ;;  %v1254_v2 = vmov 0.0  }
  0x4b   :  { %542 = vmatprep.subr.bf16.mxu0 %v1253_v0  ;;  %599 = vmatprep.subr.bf16.mxu1 %v1253_v0 }
  0x4c   :  { %1082 = vmatprep.mubr.msk.bf16.mxu0 %vm157_vm0, %v1462_v44  ;;  %1086 = vmatprep.mubr.msk.bf16.mxu1 %vm157_vm0, %v592_v28 }
  0x4e   :  { %543 = vmatpush1.bf16.msra.mxu0 %v1314_v4  ;;  %600 = vmatpush1.bf16.msra.mxu1 %v1497_v61  ;;  %v673_v4 = vld [vmem:[%s1755_s2 + $0x78] sm:$0xff] }
  0x4f   :  { %544 = vmatprep.subr.bf16.mxu0 %v1253_v0  ;;  %601 = vmatprep.subr.bf16.mxu1 %v1253_v0 }
  0x52   :  { %545 = vmatpush1.bf16.msra.mxu0 %v1328_v6  ;;  %602 = vmatpush1.bf16.msra.mxu1 %v1512_v14  ;;  %v671_v6 = vld [vmem:[%s1755_s2 + $0x68] sm:$0xff] }
  0x53   :  { %546 = vmatprep.subr.bf16.mxu0 %v1253_v0  ;;  %603 = vmatprep.subr.bf16.mxu1 %v1253_v0 }
  0x56   :  { %547 = vmatpush1.bf16.msra.mxu0 %v1342_v8  ;;  %604 = vmatpush1.bf16.msra.mxu1 %v1521_v1  ;;  %v670_v8 = vld [vmem:[%s1755_s2 + $0x60] sm:$0xff] }
  0x57   :  { %548 = vmatprep.subr.bf16.mxu0 %v1253_v0  ;;  %605 = vmatprep.subr.bf16.mxu1 %v1253_v0 }
  0x5a   :  { %549 = vmatpush1.bf16.msra.mxu0 %v1356_v10  ;;  %606 = vmatpush1.bf16.msra.mxu1 %v1530_v3  ;;  %v669_v10 = vld [vmem:[%s1755_s2 + $0x58] sm:$0xff] }
  0x5b   :  { %550 = vmatprep.subr.bf16.mxu0 %v1253_v0  ;;  %607 = vmatprep.subr.bf16.mxu1 %v1253_v0 }
  0x5e   :  { %551 = vmatpush1.bf16.msra.mxu0 %v1381_v15  ;;  %608 = vmatpush1.bf16.msra.mxu1 %v1539_v5  ;;  %v668_v15 = vld [vmem:[%s1755_s2 + $0x50] sm:$0xff] }
  0x5f   :  { %552 = vmatprep.subr.bf16.mxu0 %v1253_v0  ;;  %609 = vmatprep.subr.bf16.mxu1 %v1253_v0 }
  0x62   :  { %553 = vmatpush1.bf16.msra.mxu0 %v1401_v23  ;;  %610 = vmatpush1.bf16.msra.mxu1 %v1240_v7  ;;  %v667_v23 = vld [vmem:[%s1755_s2 + $0x48] sm:$0xff] }
  0x63   :  { %554 = vmatprep.subr.bf16.mxu0 %v1253_v0  ;;  %611 = vmatprep.subr.bf16.mxu1 %v1253_v0 }
  0x66   :  { %555 = vmatpush1.bf16.msra.mxu0 %v1422_v33  ;;  %612 = vmatpush1.bf16.msra.mxu1 %v1241_v17  ;;  %v665_v33 = vld [vmem:[%s1755_s2 + $0x38] sm:$0xff] }
  0x67   :  { %570 = vmatprep.subr.bf16.mxu0 %v1253_v0  ;;  %627 = vmatprep.subr.bf16.mxu1 %v1253_v0  ;;  %v672_v0 = vld [vmem:[%s1755_s2 + $0x70] sm:$0xff] }
  0x6a   :  { %571 = vmatpush2.bf16.msra.mxu0 %v1458_v43  ;;  %628 = vmatpush2.bf16.msra.mxu1 %v1242_v21 }
  0x6b   :  { %1129 = vmatprep.subr.mxu0 %v1254_v2  ;;  %1164 = vmatprep.subr.mxu1 %v1254_v2 }
  0x6d   :  { %573 = vmatmul.mubr.bf16.vlgmr.msra.gmra.mxu0 %v1545_v16  ;;  %630 = vmatmul.mubr.bf16.vlgmr.msra.gmra.mxu1 %v1505_v12 }
  0x6e   :  { %1130 = vmatpush3.msra.mxu0 %v673_v4  ;;  %1165 = vmatpush3.msra.mxu1 %v673_v4 }
  0x6f   :  { %1131 = vmatprep.subr.mxu0 %v1254_v2  ;;  %1166 = vmatprep.subr.mxu1 %v1254_v2 }
  0x70   :  { %1132 = vmatpush3.msra.mxu0 %v672_v0  ;;  %1167 = vmatpush3.msra.mxu1 %v672_v0 }
  0x71   :  { %1133 = vmatprep.subr.mxu0 %v1254_v2  ;;  %1168 = vmatprep.subr.mxu1 %v1254_v2 }
  0x72   :  { %1134 = vmatpush3.msra.mxu0 %v671_v6  ;;  %1169 = vmatpush3.msra.mxu1 %v671_v6 }
  0x73   :  { %1135 = vmatprep.subr.mxu0 %v1254_v2  ;;  %1170 = vmatprep.subr.mxu1 %v1254_v2 }
  0x74   :  { %1136 = vmatpush3.msra.mxu0 %v670_v8  ;;  %1171 = vmatpush3.msra.mxu1 %v670_v8 }
  0x75   :  { %1137 = vmatprep.subr.mxu0 %v1254_v2  ;;  %1172 = vmatprep.subr.mxu1 %v1254_v2 }
  0x76   :  { %1138 = vmatpush3.msra.mxu0 %v669_v10  ;;  %1173 = vmatpush3.msra.mxu1 %v669_v10 }
  0x77   :  { %1139 = vmatprep.subr.mxu0 %v1254_v2  ;;  %1174 = vmatprep.subr.mxu1 %v1254_v2 }
  0x78   :  { %1140 = vmatpush3.msra.mxu0 %v668_v15  ;;  %1175 = vmatpush3.msra.mxu1 %v668_v15 }
  0x79   :  { %1141 = vmatprep.subr.mxu0 %v1254_v2  ;;  %1176 = vmatprep.subr.mxu1 %v1254_v2 }
  0x7a   :  { %1142 = vmatpush3.msra.mxu0 %v667_v23  ;;  %1177 = vmatpush3.msra.mxu1 %v667_v23 }
  0x7b   :  { %1143 = vmatprep.subr.mxu0 %v1254_v2  ;;  %1178 = vmatprep.subr.mxu1 %v1254_v2 }
  0x7c   :  { %1144 = vmatpush3.msra.mxu0 %v666_v32  ;;  %1179 = vmatpush3.msra.mxu1 %v666_v32 }
  0x7d   :  { %1145 = vmatprep.subr.mxu0 %v1254_v2  ;;  %1180 = vmatprep.subr.mxu1 %v1254_v2 }
  0x7e   :  { %1146 = vmatpush3.msra.mxu0 %v665_v33  ;;  %1181 = vmatpush3.msra.mxu1 %v665_v33 }
  0x7f   :  { %1147 = vmatprep.subr.mxu0 %v1254_v2  ;;  %1182 = vmatprep.subr.mxu1 %v1254_v2 }
  0x80   :  { %1148 = vmatpush3.msra.mxu0 %v664_v34  ;;  %1183 = vmatpush3.msra.mxu1 %v664_v34 }
  0x81   :  { %1149 = vmatprep.subr.mxu0 %v1254_v2  ;;  %1184 = vmatprep.subr.mxu1 %v1254_v2 }
  0x82   :  { %1150 = vmatpush3.msra.mxu0 %v663_v35  ;;  %1185 = vmatpush3.msra.mxu1 %v663_v35 }
  0x83   :  { %1151 = vmatprep.subr.mxu0 %v1254_v2  ;;  %1186 = vmatprep.subr.mxu1 %v1254_v2 }
  0x84   :  { %1152 = vmatpush3.msra.mxu0 %v662_v36  ;;  %1187 = vmatpush3.msra.mxu1 %v662_v36 }
  0x85   :  { %1153 = vmatprep.subr.mxu0 %v1254_v2  ;;  %1188 = vmatprep.subr.mxu1 %v1254_v2 }
  0x86   :  { %1154 = vmatpush3.msra.mxu0 %v661_v37  ;;  %1189 = vmatpush3.msra.mxu1 %v661_v37 }
  0x87   :  { %1155 = vmatprep.subr.mxu0 %v1254_v2  ;;  %1190 = vmatprep.subr.mxu1 %v1254_v2 }
  0x88   :  { %1156 = vmatpush3.msra.mxu0 %v660_v38  ;;  %1191 = vmatpush3.msra.mxu1 %v660_v38 }
  0x89   :  { %1157 = vmatprep.subr.mxu0 %v1254_v2  ;;  %1192 = vmatprep.subr.mxu1 %v1254_v2 }
  0x8a   :  { %1158 = vmatpush3.msra.mxu0 %v659_v39  ;;  %1161 = vmatprep.mubr.msk.f32.mxu0 %vm1255_vm3, %v1254_v2 }
  0x8b   :  { %1159 = vmatprep.subr.mxu0 %v1254_v2  ;;  %1193 = vmatpush3.msra.mxu1 %v659_v39 }
  0x8c   :  { %1160 = vmatpush3.msra.mxu0 %v658_v40  ;;  %1194 = vmatprep.subr.mxu1 %v1254_v2 }
  0x8d   :  { %1195 = vmatpush3.msra.mxu1 %v658_v40  ;;  %1196 = vmatprep.mubr.msk.f32.mxu1 %vm1255_vm3, %v1254_v2 }
  0x8e   :  { %1199 = vmatprep.subr.mxu0 %v1254_v2  ;;  %1204 = vmatprep.subr.mxu1 %v1254_v2 }
  0xe5   :  { %v195_v41 = vpop.f32.mrf.mxu0  ;;  %v293_v42 = vpop.f32.mrf.mxu1 }
  0xe6   :  { %v294_v43 = vadd.f32 %v293_v42, %v195_v41 }
  0xe7   :  { %v197_v44 = vpop.f32.mrf.mxu0  ;;  %v295_v45 = vpop.f32.mrf.mxu1 }
  0xe8   :  { %v825_v44 = vld [vmem:[%s1756_s3] sm:$0xff] }
  0xe9   :  { %v198_v46 = vpop.f32.mrf.mxu0  ;;  %v296_v47 = vpop.f32.mrf.mxu1 }
  0xea   :  { %v297_v48 = vadd.f32 %v296_v47, %v198_v46 }
  0xeb   :  { %v200_v49 = vpop.f32.mrf.mxu0  ;;  %v298_v50 = vpop.f32.mrf.mxu1 }
 0x109   :  { %v424_v51 = vpop.f32.mrf.mxu0  ;;  %v530_v52 = vpop.f32.mrf.mxu1 }
 0x10a   :  { %v1706_v60 = vadd.f32 %v424_v51, %v294_v43 }
 0x10b   :  { %v426_v53 = vpop.f32.mrf.mxu0  ;;  %v532_v54 = vpop.f32.mrf.mxu1 }
 0x10c   :  { %v441_v62 = vmul.f32 %v1706_v60, %v1706_v60 }
 0x10d   :  { %v427_v55 = vpop.f32.mrf.mxu0  ;;  %v533_v56 = vpop.f32.mrf.mxu1 }
 0x10e   :  { %v1704_v59 = vadd.f32 %v427_v55, %v297_v48 }
 0x10f   :  { %v429_v57 = vpop.f32.mrf.mxu0  ;;  %v535_v58 = vpop.f32.mrf.mxu1 }
 0x110   :  { %v442_v61 = vmul.f32 %v1704_v59, %v1704_v59  ;;  %v433_v63 = vadd.f32 %v1704_v59, %v1706_v60 }
 0x112   :  { %v443_v12 = vadd.f32 %v442_v61, %v441_v62  ;;  %v434_v1 = vrot.slane %v433_v63, 4  ;;  %v973_v61 = vlaneseq }
 0x114   :  { %v444_v7 = vrot.slane %v443_v12, 4  ;;  %v435_v18 = vadd.f32 %v434_v1, %v433_v63  ;;  %v974_v62 = vshrl.u32 %v973_v61, 7 }
 0x116   :  { %v445_v25 = vadd.f32 %v444_v7, %v443_v12  ;;  %v436_v22 = vrot.slane %v435_v18, 2  ;;  %v975_v63 = vsub.s32 0, %v974_v62 }
 0x118   :  { %v446_v31 = vrot.slane %v445_v25, 2  ;;  %v437_v4 = vadd.f32 %v436_v22, %v435_v18 }
 0x11a   :  { %v447_v8 = vadd.f32 %v446_v31, %v445_v25  ;;  %v438_v23 = vrot.slane %v437_v4, 1 }
 0x11c   :  { %v448_v36 = vrot.slane %v447_v8, 1  ;;  %v439_v37 = vadd.f32 %v438_v23, %v437_v4 }
 0x11e   :  { %v449_v41 = vadd.f32 %v448_v36, %v447_v8 }
 0x12d   :  { %v574_v14 = vpop.f32.mrf.mxu0  ;;  %v631_v5 = vpop.f32.mrf.mxu1 }
 0x12e   :  { %v575_v3 = vadd.f32 %v574_v14, %v530_v52 }
 0x12f   :  { %v576_v16 = vpop.f32.mrf.mxu0  ;;  %v633_v9 = vpop.f32.mrf.mxu1 }
 0x130   :  { %v1714_v11 = vadd.f32 %v631_v5, %v575_v3 }
 0x131   :  { %v577_v17 = vpop.f32.mrf.mxu0  ;;  %v634_v20 = vpop.f32.mrf.mxu1 }
 0x132   :  { %v578_v19 = vadd.f32 %v577_v17, %v533_v56  ;;  %v648_v27 = vmul.f32 %v1714_v11, %v1714_v11  ;;  %v822_v56 = vld [vmem:[%s1758_s5] sm:$0x1] }
 0x133   :  { %v579_v21 = vpop.f32.mrf.mxu0  ;;  %v636_v13 = vpop.f32.mrf.mxu1 }
 0x134   :  { %v1716_v26 = vadd.f32 %v634_v20, %v578_v19 }
 0x136   :  { %v640_v29 = vadd.f32 %v1716_v26, %v1714_v11  ;;  %v649_v30 = vmul.f32 %v1716_v26, %v1716_v26 }
 0x138   :  { %v641_v24 = vrot.slane %v640_v29, 4  ;;  %v650_v28 = vadd.f32 %v649_v30, %v648_v27 }
 0x13a   :  { %v642_v0 = vadd.f32 %v641_v24, %v640_v29  ;;  %v651_v6 = vrot.slane %v650_v28, 4 }
 0x13c   :  { %v643_v10 = vrot.slane %v642_v0, 2  ;;  %v652_v15 = vadd.f32 %v651_v6, %v650_v28 }
 0x13e   :  { %v644_v32 = vadd.f32 %v643_v10, %v642_v0  ;;  %v653_v33 = vrot.slane %v652_v15, 2 }
 0x140   :  { %v645_v34 = vrot.slane %v644_v32, 1  ;;  %v654_v35 = vadd.f32 %v653_v33, %v652_v15 }
 0x142   :  { %v646_v38 = vadd.f32 %v645_v34, %v644_v32  ;;  %v655_v39 = vrot.slane %v654_v35, 1 }
 0x144   :  { %v647_v40 = vadd.f32 %v646_v38, %v439_v37  ;;  %v656_v42 = vadd.f32 %v655_v39, %v654_v35 }
 0x146   :  { %1162 = vmatmul.mubr.f32.vlgmr.msra.gmra.mxu0 %v647_v40  ;;  %v657_v43 = vadd.f32 %v656_v42, %v449_v41 }
 0x147   :  { %1201 = vmatprep.mubr.msk.f32.mxu0 %vm1255_vm3, %v1254_v2  ;;  %1200 = vmatpush3.msra.mxu0 %v825_v44 }
 0x148   :  { %1197 = vmatmul.mubr.f32.vlgmr.msra.gmra.mxu1 %v657_v43 }
 0x149   :  { %1206 = vmatprep.mubr.msk.f32.mxu1 %vm1255_vm3, %v1254_v2  ;;  %1205 = vmatpush3.msra.mxu1 %v825_v44  ;;  %v820_v2 = vld [vmem:[%s1757_s4] sm:$0x1] }
 0x206   :  { %v740_v45 = vpop.f32.mrf.mxu0 }
 0x207   :  { %v814_v46 = vmul.f32 0.001953125, %v740_v45 }
 0x208   :  { %v1163_v47 = vpop.f32.mrf.mxu0  ;;  %v810_v48 = vpop.f32.mrf.mxu1 }
 0x209   :  { %v816_v49 = vmul.f32 %v814_v46, %v814_v46  ;;  %v815_v50 = vmul.f32 0.001953125, %v810_v48 }
 0x20a   :  { %v1198_v51 = vpop.f32.mrf.mxu1 }
 0x20b   :  { %v817_v52 = vsub.f32 %v815_v50, %v816_v49 }
 0x20d   :  { %v818_v53 = vadd.f32 1e-05, %v817_v52 }
 0x20f   :  { %1251 = vrsqrt.f32 %v818_v53 }
 0x21c   :  { %v1252_v54 = vpop.eup %1251 }
 0x21d   :  { %v821_v55 = vmul.f32 %v1252_v54, %v820_v2 }
 0x21f   :  { %1202 = vmatmul.mubr.msk.f32.vlgmr.msra.gmra.mxu0 %vm826_vm4, %v821_v55  ;;  %v823_v57 = vmul.f32 %v821_v55, %v814_v46 }
 0x221   :  { %v824_v58 = vsub.f32 %v822_v56, %v823_v57 }
 0x223   :  { %1207 = vmatmul.mubr.msk.f32.vlgmr.msra.gmra.mxu1 %vm826_vm4, %v824_v58 }
 0x2df   :  { %v896_v12 = vpop.f32.mrf.mxu0 }
 0x2e0   :  { %v976_v14 = vrot.slane %v896_v12, %v975_v63 }
 0x2e1   :  { %v1203_v1 = vpop.f32.mrf.mxu0 }
 0x2e2   :  { %v977_v3 = vmul.f32 %v976_v14, %v1706_v60  ;;  %v978_v16 = vmul.f32 %v976_v14, %v1704_v59  ;;  %v989_v7 = vmul.f32 %v976_v14, %v1714_v11  ;;  %v990_v9 = vmul.f32 %v976_v14, %v1716_v26 }
 0x2e3   :  { %v969_v5 = vpop.f32.mrf.mxu1 }
 0x2e4   :  { %v982_v17 = vrot.slane %v969_v5, %v975_v63 }
 0x2e5   :  { %v1208_v18 = vpop.f32.mrf.mxu1 }
 0x2e6   :  { %v983_v19 = vadd.f32 %v982_v17, %v977_v3  ;;  %v984_v20 = vadd.f32 %v982_v17, %v978_v16  ;;  %v991_v21 = vadd.f32 %v989_v7, %v982_v17  ;;  %v992_v25 = vadd.f32 %v990_v9, %v982_v17 }
 0x2e8   :  { %v985_v13 = vmax.f32 %v983_v19, 0.0  ;;  %v986_v22 = vmax.f32 %v984_v20, 0.0  ;;  %v993_v27 = vmax.f32 %v991_v21, 0.0  ;;  %v994_v29 = vmax.f32 %v992_v25, 0.0 }
 0x2ea   :  { %987 = vst [vmem:[%s1759_s6] sm:$0xff] %v985_v13  ;;  %988 = vst [vmem:[%s1759_s6 + $0x8] sm:$0xff] %v986_v22 }
 0x2eb   :  { %1089 = vst [vmem:[%s1759_s6 + $0x10] sm:$0xff] %v993_v27  ;;  %1090 = vst [vmem:[%s1759_s6 + $0x18] sm:$0xff] %v994_v29 }

</bundles_post_ra>
